<compile_context>
chip_gen: v7x
topology: tpu7x:2x2x1
jax: 0.10.0
libtpu: 0.0.40
codegen_flags: <defaults>
</compile_context>

<pallas_src>
import math

import jax
import jax.numpy as jnp
import numpy as np
from jax.experimental import pallas as pl
from jax.experimental.pallas import tpu as pltpu

# ----------------------------- config ---------------------------------------
BATCH = 2
SEQ = 8
HIDDEN = 32
MLP_DIM = 64
NUM_HEADS = 4
HEAD_DIM = HIDDEN // NUM_HEADS
NUM_LAYERS = 2
LN_EPS = 1e-6
BS = BATCH * SEQ

PARAM_ORDER = (
    "ln1_w", "ln1_b", "wqkv", "bqkv", "wo", "bo",
    "ln2_w", "ln2_b", "w1", "b1", "w2", "b2",
)


# --------------------------- kernel helpers ----------------------------------
def _layer_norm(x, w, b, eps=LN_EPS):
    # x: (BS, H), w/b: (1, H) -- biased variance, matching torch.nn.LayerNorm.
    mu = jnp.mean(x, axis=-1, keepdims=True)
    var = jnp.mean(jnp.square(x - mu), axis=-1, keepdims=True)
    return (x - mu) * jax.lax.rsqrt(var + eps) * w + b


def _matmul_bf16(x, w):
    # bf16 MXU operands, f32 accumulation (fewer MXU passes on v5e/v6e/v7x).
    return jnp.dot(x.astype(jnp.bfloat16), w.astype(jnp.bfloat16),
                   preferred_element_type=jnp.float32)


# --------------------------- fused encoder kernel -----------------------------
def encoder_kernel(
    x_ref,
    ln1_w, ln1_b, wqkv, bqkv, wo, bo,
    ln2_w, ln2_b, w1, b1, w2, b2,
    enc_w, enc_b,
    out_ref,
):
    x = x_ref[...]                                  # (BS, H) f32 residual stream
    scale = 1.0 / math.sqrt(HEAD_DIM)

    for l in range(NUM_LAYERS):                     # static unroll, NUM_LAYERS=2
        # ---------------- attention sub-block (pre-norm) ----------------
        h = _layer_norm(x, ln1_w[l], ln1_b[l])
        qkv = _matmul_bf16(h, wqkv[l]) + bqkv[l]            # fused QKV: (BS, 3H)
        q = qkv[:, 0 * HIDDEN:1 * HIDDEN] * scale           # scale folded into q
        k = qkv[:, 1 * HIDDEN:2 * HIDDEN]
        v = qkv[:, 2 * HIDDEN:3 * HIDDEN]

        # Clean tile-boundary reshape (16, 32) -> (2, 8, 32); cast once for MXU.
        q3 = q.reshape(BATCH, SEQ, HIDDEN).astype(jnp.bfloat16)
        k3 = k.reshape(BATCH, SEQ, HIDDEN).astype(jnp.bfloat16)
        v3 = v.reshape(BATCH, SEQ, HIDDEN).astype(jnp.bfloat16)

        ctx_heads = []
        for hd in range(NUM_HEADS):                 # static unroll, NUM_HEADS=4
            sl = slice(hd * HEAD_DIM, (hd + 1) * HEAD_DIM)
            s = jnp.einsum("bqd,bkd->bqk", q3[:, :, sl], k3[:, :, sl],
                           preferred_element_type=jnp.float32)      # (B, S, S)
            s = s - jnp.max(s, axis=-1, keepdims=True)
            p = jnp.exp(s)
            denom = jnp.sum(p, axis=-1, keepdims=True)
            inv = pl.reciprocal(denom, approx=True)         # EUP slot (free-ish)
            inv = inv * (2.0 - denom * inv)                 # Newton step -> f32 parity
            p = (p * inv).astype(jnp.bfloat16)
            ctx = jnp.einsum("bqk,bkd->bqd", p, v3[:, :, sl],
                             preferred_element_type=jnp.float32)    # (B, S, HD)
            ctx_heads.append(ctx.reshape(BS, HEAD_DIM))

        # Lane-concat the heads -> single K=32 output projection.
        ctx_all = jnp.concatenate(ctx_heads, axis=-1)               # (BS, H)
        x = x + _matmul_bf16(ctx_all, wo[l]) + bo[l]

        # ---------------- MLP sub-block (pre-norm) ----------------
        h2 = _layer_norm(x, ln2_w[l], ln2_b[l])
        ff = _matmul_bf16(h2, w1[l]) + b1[l]
        # TODO(synk): torch.nn.functional.gelu defaults to the exact erf GELU;
        # erf has no clean Pallas-TPU lowering, so the tanh approximation is
        # used here (the pure-JAX reference below matches this choice).
        ff = jax.nn.gelu(ff, approximate=True)
        x = x + _matmul_bf16(ff, w2[l]) + b2[l]

    # Final encoder LayerNorm.
    out_ref[...] = _layer_norm(x, enc_w[...], enc_b[...])


# --------------------------- wrapper ------------------------------------------
@jax.jit
def encoder_forward(x, params):
    B, S, H = x.shape
    x2 = x.reshape(B * S, H)
    args = ([x2]
            + [params[name] for name in PARAM_ORDER]
            + [params["enc_ln_w"], params["enc_ln_b"]])

    vmem = pl.BlockSpec(memory_space=pltpu.MemorySpace.VMEM)  # whole array in VMEM
    out = pl.pallas_call(
        encoder_kernel,
        out_shape=jax.ShapeDtypeStruct((B * S, H), jnp.float32),
        in_specs=[vmem] * len(args),
        out_specs=vmem,
    )(*args)
    return out.reshape(B, S, H)


# --------------------------- param init --------------------------------------
def init_params(key):
    def dense(k, din, dout):
        kw, kb = jax.random.split(k)
        return (0.02 * jax.random.normal(kw, (din, dout), jnp.float32),
                0.02 * jax.random.normal(kb, (1, dout), jnp.float32))

    def ln(k, d):
        kw, kb = jax.random.split(k)
        return (1.0 + 0.01 * jax.random.normal(kw, (1, d), jnp.float32),
                0.01 * jax.random.normal(kb, (1, d), jnp.float32))

    keys = jax.random.split(key, NUM_LAYERS + 1)
    per_layer = []
    for lk in keys[:-1]:
        ks = jax.random.split(lk, 8)
        ln1_w, ln1_b = ln(ks[0], HIDDEN)
        ln2_w, ln2_b = ln(ks[1], HIDDEN)
        wq, bq = dense(ks[2], HIDDEN, HIDDEN)
        wk, bk = dense(ks[3], HIDDEN, HIDDEN)
        wv, bv = dense(ks[4], HIDDEN, HIDDEN)
        wo, bo = dense(ks[5], HIDDEN, HIDDEN)
        w1, b1 = dense(ks[6], HIDDEN, MLP_DIM)
        w2, b2 = dense(ks[7], MLP_DIM, HIDDEN)
        per_layer.append(dict(
            ln1_w=ln1_w, ln1_b=ln1_b,
            wqkv=jnp.concatenate([wq, wk, wv], axis=1),   # fused QKV (H, 3H)
            bqkv=jnp.concatenate([bq, bk, bv], axis=1),   # (1, 3H)
            wo=wo, bo=bo, ln2_w=ln2_w, ln2_b=ln2_b,
            w1=w1, b1=b1, w2=w2, b2=b2,
        ))

    # Stack per-layer params along a leading layer axis (indexed w[l] in-kernel).
    stacked = {name: jnp.stack([p[name] for p in per_layer], axis=0)
               for name in PARAM_ORDER}
    enc_w, enc_b = ln(keys[-1], HIDDEN)
    stacked["enc_ln_w"] = enc_w
    stacked["enc_ln_b"] = enc_b
    return stacked


# --------------------------- pure-JAX reference -------------------------------
def ref_forward(x, params):
    def lnorm(t, w, b):
        mu = t.mean(-1, keepdims=True)
        var = ((t - mu) ** 2).mean(-1, keepdims=True)
        return (t - mu) / jnp.sqrt(var + LN_EPS) * w + b

    for l in range(NUM_LAYERS):
        p = {name: params[name][l] for name in PARAM_ORDER}
        wq, wk, wv = (p["wqkv"][:, i * HIDDEN:(i + 1) * HIDDEN] for i in range(3))
        bq, bk, bv = (p["bqkv"][:, i * HIDDEN:(i + 1) * HIDDEN] for i in range(3))
        h = lnorm(x, p["ln1_w"], p["ln1_b"])
        q = h @ wq + bq
        k = h @ wk + bk
        v = h @ wv + bv
        q = q.reshape(BATCH, SEQ, NUM_HEADS, HEAD_DIM).transpose(0, 2, 1, 3)
        k = k.reshape(BATCH, SEQ, NUM_HEADS, HEAD_DIM).transpose(0, 2, 1, 3)
        v = v.reshape(BATCH, SEQ, NUM_HEADS, HEAD_DIM).transpose(0, 2, 1, 3)
        s = (q @ k.transpose(0, 1, 3, 2)) / math.sqrt(HEAD_DIM)
        a = jax.nn.softmax(s, axis=-1)
        ctx = (a @ v).transpose(0, 2, 1, 3).reshape(BATCH, SEQ, HIDDEN)
        x = x + ctx @ p["wo"] + p["bo"]
        h2 = lnorm(x, p["ln2_w"], p["ln2_b"])
        ff = jax.nn.gelu(h2 @ p["w1"] + p["b1"], approximate=True)
        x = x + ff @ p["w2"] + p["b2"]
    return lnorm(x, params["enc_ln_w"], params["enc_ln_b"])


# ------------------------------- main -----------------------------------------
if __name__ == "__main__":
    key = jax.random.PRNGKey(0)
    kx, kp = jax.random.split(key)
    x = jax.random.normal(kx, (BATCH, SEQ, HIDDEN), jnp.float32)
    params = init_params(kp)

    out = jax.block_until_ready(encoder_forward(x, params))

    ref = ref_forward(x, params)
    np.testing.assert_allclose(np.asarray(out), np.asarray(ref),
                               rtol=2e-3, atol=2e-3)
    print("KERNEL_OK")
</pallas_src>

<mosaic_0001>
module attributes {stable_mosaic.version = 11 : i64} {
  func.func @encoder_kernel(%arg0: memref<16x32xf32, #tpu.memory_space<vmem>>, %arg1: memref<2x1x32xf32, #tpu.memory_space<vmem>>, %arg2: memref<2x1x32xf32, #tpu.memory_space<vmem>>, %arg3: memref<2x32x96xf32, #tpu.memory_space<vmem>>, %arg4: memref<2x1x96xf32, #tpu.memory_space<vmem>>, %arg5: memref<2x32x32xf32, #tpu.memory_space<vmem>>, %arg6: memref<2x1x32xf32, #tpu.memory_space<vmem>>, %arg7: memref<2x1x32xf32, #tpu.memory_space<vmem>>, %arg8: memref<2x1x32xf32, #tpu.memory_space<vmem>>, %arg9: memref<2x32x64xf32, #tpu.memory_space<vmem>>, %arg10: memref<2x1x64xf32, #tpu.memory_space<vmem>>, %arg11: memref<2x64x32xf32, #tpu.memory_space<vmem>>, %arg12: memref<2x1x32xf32, #tpu.memory_space<vmem>>, %arg13: memref<1x32xf32, #tpu.memory_space<vmem>>, %arg14: memref<1x32xf32, #tpu.memory_space<vmem>>, %arg15: memref<16x32xf32, #tpu.memory_space<vmem>>) attributes {dimension_semantics = [], scalar_prefetch = 0 : i64, scratch_operands = 0 : i64, tpu.core_type = #tpu.core_type<tc>} {
    %c0 = arith.constant 0 : index
    %c0_0 = arith.constant 0 : index
    %0 = vector.load %arg0[%c0, %c0_0] : memref<16x32xf32, #tpu.memory_space<vmem>>, vector<16x32xf32>
    %c0_1 = arith.constant 0 : index
    %c0_2 = arith.constant 0 : index
    %c0_3 = arith.constant 0 : index
    %1 = vector.load %arg1[%c0_1, %c0_2, %c0_3] : memref<2x1x32xf32, #tpu.memory_space<vmem>>, vector<1x1x32xf32>
    %2 = vector.shape_cast %1 : vector<1x1x32xf32> to vector<1x32xf32>
    %c0_4 = arith.constant 0 : index
    %c0_5 = arith.constant 0 : index
    %c0_6 = arith.constant 0 : index
    %3 = vector.load %arg2[%c0_4, %c0_5, %c0_6] : memref<2x1x32xf32, #tpu.memory_space<vmem>>, vector<1x1x32xf32>
    %4 = vector.shape_cast %3 : vector<1x1x32xf32> to vector<1x32xf32>
    %cst = arith.constant dense<0.000000e+00> : vector<16xf32>
    %5 = vector.multi_reduction <add>, %0, %cst [1] : vector<16x32xf32> to vector<16xf32>
    %6 = vector.shape_cast %5 : vector<16xf32> to vector<16x1xf32>
    %cst_7 = arith.constant 3.200000e+01 : f32
    %7 = vector.broadcast %cst_7 : f32 to vector<16x1xf32>
    %8 = arith.divf %6, %7 : vector<16x1xf32>
    %9 = vector.broadcast %8 : vector<16x1xf32> to vector<16x32xf32>
    %10 = arith.subf %0, %9 : vector<16x32xf32>
    %11 = arith.mulf %10, %10 : vector<16x32xf32>
    %cst_8 = arith.constant dense<0.000000e+00> : vector<16xf32>
    %12 = vector.multi_reduction <add>, %11, %cst_8 [1] : vector<16x32xf32> to vector<16xf32>
    %13 = vector.shape_cast %12 : vector<16xf32> to vector<16x1xf32>
    %cst_9 = arith.constant 3.200000e+01 : f32
    %14 = vector.broadcast %cst_9 : f32 to vector<16x1xf32>
    %15 = arith.divf %13, %14 : vector<16x1xf32>
    %16 = vector.broadcast %8 : vector<16x1xf32> to vector<16x32xf32>
    %17 = arith.subf %0, %16 : vector<16x32xf32>
    %cst_10 = arith.constant 9.99999997E-7 : f32
    %18 = vector.broadcast %cst_10 : f32 to vector<16x1xf32>
    %19 = arith.addf %15, %18 : vector<16x1xf32>
    %20 = math.rsqrt %19 : vector<16x1xf32>
    %21 = vector.broadcast %20 : vector<16x1xf32> to vector<16x32xf32>
    %22 = arith.mulf %17, %21 : vector<16x32xf32>
    %23 = vector.broadcast %2 : vector<1x32xf32> to vector<16x32xf32>
    %24 = arith.mulf %22, %23 : vector<16x32xf32>
    %25 = vector.broadcast %4 : vector<1x32xf32> to vector<16x32xf32>
    %26 = arith.addf %24, %25 : vector<16x32xf32>
    %c0_11 = arith.constant 0 : index
    %c0_12 = arith.constant 0 : index
    %c0_13 = arith.constant 0 : index
    %27 = vector.load %arg3[%c0_11, %c0_12, %c0_13] : memref<2x32x96xf32, #tpu.memory_space<vmem>>, vector<1x32x96xf32>
    %28 = vector.shape_cast %27 : vector<1x32x96xf32> to vector<32x96xf32>
    %29 = arith.truncf %26 : vector<16x32xf32> to vector<16x32xbf16>
    %30 = arith.truncf %28 : vector<32x96xf32> to vector<32x96xbf16>
    %cst_14 = arith.constant dense<0.000000e+00> : vector<16x96xf32>
    %31 = tpu.matmul %29, %30, %cst_14 {dimension_numbers = #tpu.dot_dimension_numbers<[1], [0], [0], [1], [0, 0, 1, 1], [], []>} : vector<16x32xbf16>, vector<32x96xbf16>, vector<16x96xf32> -> vector<16x96xf32>
    %c0_15 = arith.constant 0 : index
    %c0_16 = arith.constant 0 : index
    %c0_17 = arith.constant 0 : index
    %32 = vector.load %arg4[%c0_15, %c0_16, %c0_17] : memref<2x1x96xf32, #tpu.memory_space<vmem>>, vector<1x1x96xf32>
    %33 = vector.shape_cast %32 : vector<1x1x96xf32> to vector<1x96xf32>
    %34 = vector.broadcast %33 : vector<1x96xf32> to vector<16x96xf32>
    %35 = arith.addf %31, %34 : vector<16x96xf32>
    %36 = vector.extract_strided_slice %35 {offsets = [0, 0], sizes = [16, 32], strides = [1, 1]} : vector<16x96xf32> to vector<16x32xf32>
    %cst_18 = arith.constant 0.353553385 : f32
    %37 = vector.broadcast %cst_18 : f32 to vector<16x32xf32>
    %38 = arith.mulf %36, %37 : vector<16x32xf32>
    %39 = vector.extract_strided_slice %35 {offsets = [0, 32], sizes = [16, 32], strides = [1, 1]} : vector<16x96xf32> to vector<16x32xf32>
    %40 = vector.extract_strided_slice %35 {offsets = [0, 64], sizes = [16, 32], strides = [1, 1]} : vector<16x96xf32> to vector<16x32xf32>
    %41 = vector.shape_cast %38 : vector<16x32xf32> to vector<2x8x32xf32>
    %42 = arith.truncf %41 : vector<2x8x32xf32> to vector<2x8x32xbf16>
    %43 = vector.shape_cast %39 : vector<16x32xf32> to vector<2x8x32xf32>
    %44 = arith.truncf %43 : vector<2x8x32xf32> to vector<2x8x32xbf16>
    %45 = vector.shape_cast %40 : vector<16x32xf32> to vector<2x8x32xf32>
    %46 = arith.truncf %45 : vector<2x8x32xf32> to vector<2x8x32xbf16>
    %47 = vector.extract_strided_slice %42 {offsets = [0, 0, 0], sizes = [2, 8, 8], strides = [1, 1, 1]} : vector<2x8x32xbf16> to vector<2x8x8xbf16>
    %48 = vector.extract_strided_slice %44 {offsets = [0, 0, 0], sizes = [2, 8, 8], strides = [1, 1, 1]} : vector<2x8x32xbf16> to vector<2x8x8xbf16>
    "tpu.trace_start"() <{level = 10 : i32, message = "bqd,bkd->bqk"}> : () -> ()
    %cst_19 = arith.constant dense<0.000000e+00> : vector<2x8x8xf32>
    %49 = tpu.matmul %47, %48, %cst_19 {dimension_numbers = #tpu.dot_dimension_numbers<[2], [2], [1], [1], [0, 0, 0, 1, 1, 1], [0], [0]>} : vector<2x8x8xbf16>, vector<2x8x8xbf16>, vector<2x8x8xf32> -> vector<2x8x8xf32>
    "tpu.trace_stop"() : () -> ()
    %cst_20 = arith.constant dense<0xFF800000> : vector<2x8xf32>
    %50 = vector.multi_reduction <maximumf>, %49, %cst_20 [2] : vector<2x8x8xf32> to vector<2x8xf32>
    %51 = vector.shape_cast %50 : vector<2x8xf32> to vector<2x8x1xf32>
    %52 = vector.broadcast %51 : vector<2x8x1xf32> to vector<2x8x8xf32>
    %53 = arith.subf %49, %52 : vector<2x8x8xf32>
    %54 = math.exp %53 : vector<2x8x8xf32>
    %cst_21 = arith.constant dense<0.000000e+00> : vector<2x8xf32>
    %55 = vector.multi_reduction <add>, %54, %cst_21 [2] : vector<2x8x8xf32> to vector<2x8xf32>
    %56 = vector.shape_cast %55 : vector<2x8xf32> to vector<2x8x1xf32>
    %57 = tpu.reciprocal %56 {approx = true} : vector<2x8x1xf32> -> vector<2x8x1xf32>
    %58 = arith.mulf %56, %57 : vector<2x8x1xf32>
    %cst_22 = arith.constant 2.000000e+00 : f32
    %59 = vector.broadcast %cst_22 : f32 to vector<2x8x1xf32>
    %60 = arith.subf %59, %58 : vector<2x8x1xf32>
    %61 = arith.mulf %57, %60 : vector<2x8x1xf32>
    %62 = vector.broadcast %61 : vector<2x8x1xf32> to vector<2x8x8xf32>
    %63 = arith.mulf %54, %62 : vector<2x8x8xf32>
    %64 = arith.truncf %63 : vector<2x8x8xf32> to vector<2x8x8xbf16>
    %65 = vector.extract_strided_slice %46 {offsets = [0, 0, 0], sizes = [2, 8, 8], strides = [1, 1, 1]} : vector<2x8x32xbf16> to vector<2x8x8xbf16>
    "tpu.trace_start"() <{level = 10 : i32, message = "bqk,bkd->bqd"}> : () -> ()
    %cst_23 = arith.constant dense<0.000000e+00> : vector<2x8x8xf32>
    %66 = tpu.matmul %64, %65, %cst_23 {dimension_numbers = #tpu.dot_dimension_numbers<[2], [1], [1], [2], [0, 0, 0, 1, 1, 2], [0], [0]>} : vector<2x8x8xbf16>, vector<2x8x8xbf16>, vector<2x8x8xf32> -> vector<2x8x8xf32>
    "tpu.trace_stop"() : () -> ()
    %67 = vector.shape_cast %66 : vector<2x8x8xf32> to vector<16x8xf32>
    %68 = vector.extract_strided_slice %42 {offsets = [0, 0, 8], sizes = [2, 8, 8], strides = [1, 1, 1]} : vector<2x8x32xbf16> to vector<2x8x8xbf16>
    %69 = vector.extract_strided_slice %44 {offsets = [0, 0, 8], sizes = [2, 8, 8], strides = [1, 1, 1]} : vector<2x8x32xbf16> to vector<2x8x8xbf16>
    "tpu.trace_start"() <{level = 10 : i32, message = "bqd,bkd->bqk"}> : () -> ()
    %cst_24 = arith.constant dense<0.000000e+00> : vector<2x8x8xf32>
    %70 = tpu.matmul %68, %69, %cst_24 {dimension_numbers = #tpu.dot_dimension_numbers<[2], [2], [1], [1], [0, 0, 0, 1, 1, 1], [0], [0]>} : vector<2x8x8xbf16>, vector<2x8x8xbf16>, vector<2x8x8xf32> -> vector<2x8x8xf32>
    "tpu.trace_stop"() : () -> ()
    %cst_25 = arith.constant dense<0xFF800000> : vector<2x8xf32>
    %71 = vector.multi_reduction <maximumf>, %70, %cst_25 [2] : vector<2x8x8xf32> to vector<2x8xf32>
    %72 = vector.shape_cast %71 : vector<2x8xf32> to vector<2x8x1xf32>
    %73 = vector.broadcast %72 : vector<2x8x1xf32> to vector<2x8x8xf32>
    %74 = arith.subf %70, %73 : vector<2x8x8xf32>
    %75 = math.exp %74 : vector<2x8x8xf32>
    %cst_26 = arith.constant dense<0.000000e+00> : vector<2x8xf32>
    %76 = vector.multi_reduction <add>, %75, %cst_26 [2] : vector<2x8x8xf32> to vector<2x8xf32>
    %77 = vector.shape_cast %76 : vector<2x8xf32> to vector<2x8x1xf32>
    %78 = tpu.reciprocal %77 {approx = true} : vector<2x8x1xf32> -> vector<2x8x1xf32>
    %79 = arith.mulf %77, %78 : vector<2x8x1xf32>
    %cst_27 = arith.constant 2.000000e+00 : f32
    %80 = vector.broadcast %cst_27 : f32 to vector<2x8x1xf32>
    %81 = arith.subf %80, %79 : vector<2x8x1xf32>
    %82 = arith.mulf %78, %81 : vector<2x8x1xf32>
    %83 = vector.broadcast %82 : vector<2x8x1xf32> to vector<2x8x8xf32>
    %84 = arith.mulf %75, %83 : vector<2x8x8xf32>
    %85 = arith.truncf %84 : vector<2x8x8xf32> to vector<2x8x8xbf16>
    %86 = vector.extract_strided_slice %46 {offsets = [0, 0, 8], sizes = [2, 8, 8], strides = [1, 1, 1]} : vector<2x8x32xbf16> to vector<2x8x8xbf16>
    "tpu.trace_start"() <{level = 10 : i32, message = "bqk,bkd->bqd"}> : () -> ()
    %cst_28 = arith.constant dense<0.000000e+00> : vector<2x8x8xf32>
    %87 = tpu.matmul %85, %86, %cst_28 {dimension_numbers = #tpu.dot_dimension_numbers<[2], [1], [1], [2], [0, 0, 0, 1, 1, 2], [0], [0]>} : vector<2x8x8xbf16>, vector<2x8x8xbf16>, vector<2x8x8xf32> -> vector<2x8x8xf32>
    "tpu.trace_stop"() : () -> ()
    %88 = vector.shape_cast %87 : vector<2x8x8xf32> to vector<16x8xf32>
    %89 = vector.extract_strided_slice %42 {offsets = [0, 0, 16], sizes = [2, 8, 8], strides = [1, 1, 1]} : vector<2x8x32xbf16> to vector<2x8x8xbf16>
    %90 = vector.extract_strided_slice %44 {offsets = [0, 0, 16], sizes = [2, 8, 8], strides = [1, 1, 1]} : vector<2x8x32xbf16> to vector<2x8x8xbf16>
    "tpu.trace_start"() <{level = 10 : i32, message = "bqd,bkd->bqk"}> : () -> ()
    %cst_29 = arith.constant dense<0.000000e+00> : vector<2x8x8xf32>
    %91 = tpu.matmul %89, %90, %cst_29 {dimension_numbers = #tpu.dot_dimension_numbers<[2], [2], [1], [1], [0, 0, 0, 1, 1, 1], [0], [0]>} : vector<2x8x8xbf16>, vector<2x8x8xbf16>, vector<2x8x8xf32> -> vector<2x8x8xf32>
    "tpu.trace_stop"() : () -> ()
    %cst_30 = arith.constant dense<0xFF800000> : vector<2x8xf32>
    %92 = vector.multi_reduction <maximumf>, %91, %cst_30 [2] : vector<2x8x8xf32> to vector<2x8xf32>
    %93 = vector.shape_cast %92 : vector<2x8xf32> to vector<2x8x1xf32>
    %94 = vector.broadcast %93 : vector<2x8x1xf32> to vector<2x8x8xf32>
    %95 = arith.subf %91, %94 : vector<2x8x8xf32>
    %96 = math.exp %95 : vector<2x8x8xf32>
    %cst_31 = arith.constant dense<0.000000e+00> : vector<2x8xf32>
    %97 = vector.multi_reduction <add>, %96, %cst_31 [2] : vector<2x8x8xf32> to vector<2x8xf32>
    %98 = vector.shape_cast %97 : vector<2x8xf32> to vector<2x8x1xf32>
    %99 = tpu.reciprocal %98 {approx = true} : vector<2x8x1xf32> -> vector<2x8x1xf32>
    %100 = arith.mulf %98, %99 : vector<2x8x1xf32>
    %cst_32 = arith.constant 2.000000e+00 : f32
    %101 = vector.broadcast %cst_32 : f32 to vector<2x8x1xf32>
    %102 = arith.subf %101, %100 : vector<2x8x1xf32>
    %103 = arith.mulf %99, %102 : vector<2x8x1xf32>
    %104 = vector.broadcast %103 : vector<2x8x1xf32> to vector<2x8x8xf32>
    %105 = arith.mulf %96, %104 : vector<2x8x8xf32>
    %106 = arith.truncf %105 : vector<2x8x8xf32> to vector<2x8x8xbf16>
    %107 = vector.extract_strided_slice %46 {offsets = [0, 0, 16], sizes = [2, 8, 8], strides = [1, 1, 1]} : vector<2x8x32xbf16> to vector<2x8x8xbf16>
    "tpu.trace_start"() <{level = 10 : i32, message = "bqk,bkd->bqd"}> : () -> ()
    %cst_33 = arith.constant dense<0.000000e+00> : vector<2x8x8xf32>
    %108 = tpu.matmul %106, %107, %cst_33 {dimension_numbers = #tpu.dot_dimension_numbers<[2], [1], [1], [2], [0, 0, 0, 1, 1, 2], [0], [0]>} : vector<2x8x8xbf16>, vector<2x8x8xbf16>, vector<2x8x8xf32> -> vector<2x8x8xf32>
    "tpu.trace_stop"() : () -> ()
    %109 = vector.shape_cast %108 : vector<2x8x8xf32> to vector<16x8xf32>
    %110 = vector.extract_strided_slice %42 {offsets = [0, 0, 24], sizes = [2, 8, 8], strides = [1, 1, 1]} : vector<2x8x32xbf16> to vector<2x8x8xbf16>
    %111 = vector.extract_strided_slice %44 {offsets = [0, 0, 24], sizes = [2, 8, 8], strides = [1, 1, 1]} : vector<2x8x32xbf16> to vector<2x8x8xbf16>
    "tpu.trace_start"() <{level = 10 : i32, message = "bqd,bkd->bqk"}> : () -> ()
    %cst_34 = arith.constant dense<0.000000e+00> : vector<2x8x8xf32>
    %112 = tpu.matmul %110, %111, %cst_34 {dimension_numbers = #tpu.dot_dimension_numbers<[2], [2], [1], [1], [0, 0, 0, 1, 1, 1], [0], [0]>} : vector<2x8x8xbf16>, vector<2x8x8xbf16>, vector<2x8x8xf32> -> vector<2x8x8xf32>
    "tpu.trace_stop"() : () -> ()
    %cst_35 = arith.constant dense<0xFF800000> : vector<2x8xf32>
    %113 = vector.multi_reduction <maximumf>, %112, %cst_35 [2] : vector<2x8x8xf32> to vector<2x8xf32>
    %114 = vector.shape_cast %113 : vector<2x8xf32> to vector<2x8x1xf32>
    %115 = vector.broadcast %114 : vector<2x8x1xf32> to vector<2x8x8xf32>
    %116 = arith.subf %112, %115 : vector<2x8x8xf32>
    %117 = math.exp %116 : vector<2x8x8xf32>
    %cst_36 = arith.constant dense<0.000000e+00> : vector<2x8xf32>
    %118 = vector.multi_reduction <add>, %117, %cst_36 [2] : vector<2x8x8xf32> to vector<2x8xf32>
    %119 = vector.shape_cast %118 : vector<2x8xf32> to vector<2x8x1xf32>
    %120 = tpu.reciprocal %119 {approx = true} : vector<2x8x1xf32> -> vector<2x8x1xf32>
    %121 = arith.mulf %119, %120 : vector<2x8x1xf32>
    %cst_37 = arith.constant 2.000000e+00 : f32
    %122 = vector.broadcast %cst_37 : f32 to vector<2x8x1xf32>
    %123 = arith.subf %122, %121 : vector<2x8x1xf32>
    %124 = arith.mulf %120, %123 : vector<2x8x1xf32>
    %125 = vector.broadcast %124 : vector<2x8x1xf32> to vector<2x8x8xf32>
    %126 = arith.mulf %117, %125 : vector<2x8x8xf32>
    %127 = arith.truncf %126 : vector<2x8x8xf32> to vector<2x8x8xbf16>
    %128 = vector.extract_strided_slice %46 {offsets = [0, 0, 24], sizes = [2, 8, 8], strides = [1, 1, 1]} : vector<2x8x32xbf16> to vector<2x8x8xbf16>
    "tpu.trace_start"() <{level = 10 : i32, message = "bqk,bkd->bqd"}> : () -> ()
    %cst_38 = arith.constant dense<0.000000e+00> : vector<2x8x8xf32>
    %129 = tpu.matmul %127, %128, %cst_38 {dimension_numbers = #tpu.dot_dimension_numbers<[2], [1], [1], [2], [0, 0, 0, 1, 1, 2], [0], [0]>} : vector<2x8x8xbf16>, vector<2x8x8xbf16>, vector<2x8x8xf32> -> vector<2x8x8xf32>
    "tpu.trace_stop"() : () -> ()
    %130 = vector.shape_cast %129 : vector<2x8x8xf32> to vector<16x8xf32>
    %131 = tpu.concatenate %67, %88, %109, %130 in 1 : vector<16x8xf32>, vector<16x8xf32>, vector<16x8xf32>, vector<16x8xf32> -> vector<16x32xf32>
    %c0_39 = arith.constant 0 : index
    %c0_40 = arith.constant 0 : index
    %c0_41 = arith.constant 0 : index
    %132 = vector.load %arg5[%c0_39, %c0_40, %c0_41] : memref<2x32x32xf32, #tpu.memory_space<vmem>>, vector<1x32x32xf32>
    %133 = vector.shape_cast %132 : vector<1x32x32xf32> to vector<32x32xf32>
    %134 = arith.truncf %131 : vector<16x32xf32> to vector<16x32xbf16>
    %135 = arith.truncf %133 : vector<32x32xf32> to vector<32x32xbf16>
    %cst_42 = arith.constant dense<0.000000e+00> : vector<16x32xf32>
    %136 = tpu.matmul %134, %135, %cst_42 {dimension_numbers = #tpu.dot_dimension_numbers<[1], [0], [0], [1], [0, 0, 1, 1], [], []>} : vector<16x32xbf16>, vector<32x32xbf16>, vector<16x32xf32> -> vector<16x32xf32>
    %137 = arith.addf %0, %136 : vector<16x32xf32>
    %c0_43 = arith.constant 0 : index
    %c0_44 = arith.constant 0 : index
    %c0_45 = arith.constant 0 : index
    %138 = vector.load %arg6[%c0_43, %c0_44, %c0_45] : memref<2x1x32xf32, #tpu.memory_space<vmem>>, vector<1x1x32xf32>
    %139 = vector.shape_cast %138 : vector<1x1x32xf32> to vector<1x32xf32>
    %140 = vector.broadcast %139 : vector<1x32xf32> to vector<16x32xf32>
    %141 = arith.addf %137, %140 : vector<16x32xf32>
    %c0_46 = arith.constant 0 : index
    %c0_47 = arith.constant 0 : index
    %c0_48 = arith.constant 0 : index
    %142 = vector.load %arg7[%c0_46, %c0_47, %c0_48] : memref<2x1x32xf32, #tpu.memory_space<vmem>>, vector<1x1x32xf32>
    %143 = vector.shape_cast %142 : vector<1x1x32xf32> to vector<1x32xf32>
    %c0_49 = arith.constant 0 : index
    %c0_50 = arith.constant 0 : index
    %c0_51 = arith.constant 0 : index
    %144 = vector.load %arg8[%c0_49, %c0_50, %c0_51] : memref<2x1x32xf32, #tpu.memory_space<vmem>>, vector<1x1x32xf32>
    %145 = vector.shape_cast %144 : vector<1x1x32xf32> to vector<1x32xf32>
    %cst_52 = arith.constant dense<0.000000e+00> : vector<16xf32>
    %146 = vector.multi_reduction <add>, %141, %cst_52 [1] : vector<16x32xf32> to vector<16xf32>
    %147 = vector.shape_cast %146 : vector<16xf32> to vector<16x1xf32>
    %cst_53 = arith.constant 3.200000e+01 : f32
    %148 = vector.broadcast %cst_53 : f32 to vector<16x1xf32>
    %149 = arith.divf %147, %148 : vector<16x1xf32>
    %150 = vector.broadcast %149 : vector<16x1xf32> to vector<16x32xf32>
    %151 = arith.subf %141, %150 : vector<16x32xf32>
    %152 = arith.mulf %151, %151 : vector<16x32xf32>
    %cst_54 = arith.constant dense<0.000000e+00> : vector<16xf32>
    %153 = vector.multi_reduction <add>, %152, %cst_54 [1] : vector<16x32xf32> to vector<16xf32>
    %154 = vector.shape_cast %153 : vector<16xf32> to vector<16x1xf32>
    %cst_55 = arith.constant 3.200000e+01 : f32
    %155 = vector.broadcast %cst_55 : f32 to vector<16x1xf32>
    %156 = arith.divf %154, %155 : vector<16x1xf32>
    %157 = vector.broadcast %149 : vector<16x1xf32> to vector<16x32xf32>
    %158 = arith.subf %141, %157 : vector<16x32xf32>
    %cst_56 = arith.constant 9.99999997E-7 : f32
    %159 = vector.broadcast %cst_56 : f32 to vector<16x1xf32>
    %160 = arith.addf %156, %159 : vector<16x1xf32>
    %161 = math.rsqrt %160 : vector<16x1xf32>
    %162 = vector.broadcast %161 : vector<16x1xf32> to vector<16x32xf32>
    %163 = arith.mulf %158, %162 : vector<16x32xf32>
    %164 = vector.broadcast %143 : vector<1x32xf32> to vector<16x32xf32>
    %165 = arith.mulf %163, %164 : vector<16x32xf32>
    %166 = vector.broadcast %145 : vector<1x32xf32> to vector<16x32xf32>
    %167 = arith.addf %165, %166 : vector<16x32xf32>
    %c0_57 = arith.constant 0 : index
    %c0_58 = arith.constant 0 : index
    %c0_59 = arith.constant 0 : index
    %168 = vector.load %arg9[%c0_57, %c0_58, %c0_59] : memref<2x32x64xf32, #tpu.memory_space<vmem>>, vector<1x32x64xf32>
    %169 = vector.shape_cast %168 : vector<1x32x64xf32> to vector<32x64xf32>
    %170 = arith.truncf %167 : vector<16x32xf32> to vector<16x32xbf16>
    %171 = arith.truncf %169 : vector<32x64xf32> to vector<32x64xbf16>
    %cst_60 = arith.constant dense<0.000000e+00> : vector<16x64xf32>
    %172 = tpu.matmul %170, %171, %cst_60 {dimension_numbers = #tpu.dot_dimension_numbers<[1], [0], [0], [1], [0, 0, 1, 1], [], []>} : vector<16x32xbf16>, vector<32x64xbf16>, vector<16x64xf32> -> vector<16x64xf32>
    %c0_61 = arith.constant 0 : index
    %c0_62 = arith.constant 0 : index
    %c0_63 = arith.constant 0 : index
    %173 = vector.load %arg10[%c0_61, %c0_62, %c0_63] : memref<2x1x64xf32, #tpu.memory_space<vmem>>, vector<1x1x64xf32>
    %174 = vector.shape_cast %173 : vector<1x1x64xf32> to vector<1x64xf32>
    %175 = vector.broadcast %174 : vector<1x64xf32> to vector<16x64xf32>
    %176 = arith.addf %172, %175 : vector<16x64xf32>
    %177 = arith.mulf %176, %176 : vector<16x64xf32>
    %178 = arith.mulf %176, %177 : vector<16x64xf32>
    %cst_64 = arith.constant 4.471500e-02 : f32
    %179 = vector.broadcast %cst_64 : f32 to vector<16x64xf32>
    %180 = arith.mulf %179, %178 : vector<16x64xf32>
    %181 = arith.addf %176, %180 : vector<16x64xf32>
    %cst_65 = arith.constant 0.797884583 : f32
    %182 = vector.broadcast %cst_65 : f32 to vector<16x64xf32>
    %183 = arith.mulf %182, %181 : vector<16x64xf32>
    %184 = math.tanh %183 : vector<16x64xf32>
    %cst_66 = arith.constant 1.000000e+00 : f32
    %185 = vector.broadcast %cst_66 : f32 to vector<16x64xf32>
    %186 = arith.addf %185, %184 : vector<16x64xf32>
    %cst_67 = arith.constant 5.000000e-01 : f32
    %187 = vector.broadcast %cst_67 : f32 to vector<16x64xf32>
    %188 = arith.mulf %187, %186 : vector<16x64xf32>
    %189 = arith.mulf %176, %188 : vector<16x64xf32>
    %c0_68 = arith.constant 0 : index
    %c0_69 = arith.constant 0 : index
    %c0_70 = arith.constant 0 : index
    %190 = vector.load %arg11[%c0_68, %c0_69, %c0_70] : memref<2x64x32xf32, #tpu.memory_space<vmem>>, vector<1x64x32xf32>
    %191 = vector.shape_cast %190 : vector<1x64x32xf32> to vector<64x32xf32>
    %192 = arith.truncf %189 : vector<16x64xf32> to vector<16x64xbf16>
    %193 = arith.truncf %191 : vector<64x32xf32> to vector<64x32xbf16>
    %cst_71 = arith.constant dense<0.000000e+00> : vector<16x32xf32>
    %194 = tpu.matmul %192, %193, %cst_71 {dimension_numbers = #tpu.dot_dimension_numbers<[1], [0], [0], [1], [0, 0, 1, 1], [], []>} : vector<16x64xbf16>, vector<64x32xbf16>, vector<16x32xf32> -> vector<16x32xf32>
    %195 = arith.addf %141, %194 : vector<16x32xf32>
    %c0_72 = arith.constant 0 : index
    %c0_73 = arith.constant 0 : index
    %c0_74 = arith.constant 0 : index
    %196 = vector.load %arg12[%c0_72, %c0_73, %c0_74] : memref<2x1x32xf32, #tpu.memory_space<vmem>>, vector<1x1x32xf32>
    %197 = vector.shape_cast %196 : vector<1x1x32xf32> to vector<1x32xf32>
    %198 = vector.broadcast %197 : vector<1x32xf32> to vector<16x32xf32>
    %199 = arith.addf %195, %198 : vector<16x32xf32>
    %c1 = arith.constant 1 : index
    %c0_75 = arith.constant 0 : index
    %c0_76 = arith.constant 0 : index
    %200 = vector.load %arg1[%c1, %c0_75, %c0_76] : memref<2x1x32xf32, #tpu.memory_space<vmem>>, vector<1x1x32xf32>
    %201 = vector.shape_cast %200 : vector<1x1x32xf32> to vector<1x32xf32>
    %c1_77 = arith.constant 1 : index
    %c0_78 = arith.constant 0 : index
    %c0_79 = arith.constant 0 : index
    %202 = vector.load %arg2[%c1_77, %c0_78, %c0_79] : memref<2x1x32xf32, #tpu.memory_space<vmem>>, vector<1x1x32xf32>
    %203 = vector.shape_cast %202 : vector<1x1x32xf32> to vector<1x32xf32>
    %cst_80 = arith.constant dense<0.000000e+00> : vector<16xf32>
    %204 = vector.multi_reduction <add>, %199, %cst_80 [1] : vector<16x32xf32> to vector<16xf32>
    %205 = vector.shape_cast %204 : vector<16xf32> to vector<16x1xf32>
    %cst_81 = arith.constant 3.200000e+01 : f32
    %206 = vector.broadcast %cst_81 : f32 to vector<16x1xf32>
    %207 = arith.divf %205, %206 : vector<16x1xf32>
    %208 = vector.broadcast %207 : vector<16x1xf32> to vector<16x32xf32>
    %209 = arith.subf %199, %208 : vector<16x32xf32>
    %210 = arith.mulf %209, %209 : vector<16x32xf32>
    %cst_82 = arith.constant dense<0.000000e+00> : vector<16xf32>
    %211 = vector.multi_reduction <add>, %210, %cst_82 [1] : vector<16x32xf32> to vector<16xf32>
    %212 = vector.shape_cast %211 : vector<16xf32> to vector<16x1xf32>
    %cst_83 = arith.constant 3.200000e+01 : f32
    %213 = vector.broadcast %cst_83 : f32 to vector<16x1xf32>
    %214 = arith.divf %212, %213 : vector<16x1xf32>
    %215 = vector.broadcast %207 : vector<16x1xf32> to vector<16x32xf32>
    %216 = arith.subf %199, %215 : vector<16x32xf32>
    %cst_84 = arith.constant 9.99999997E-7 : f32
    %217 = vector.broadcast %cst_84 : f32 to vector<16x1xf32>
    %218 = arith.addf %214, %217 : vector<16x1xf32>
    %219 = math.rsqrt %218 : vector<16x1xf32>
    %220 = vector.broadcast %219 : vector<16x1xf32> to vector<16x32xf32>
    %221 = arith.mulf %216, %220 : vector<16x32xf32>
    %222 = vector.broadcast %201 : vector<1x32xf32> to vector<16x32xf32>
    %223 = arith.mulf %221, %222 : vector<16x32xf32>
    %224 = vector.broadcast %203 : vector<1x32xf32> to vector<16x32xf32>
    %225 = arith.addf %223, %224 : vector<16x32xf32>
    %c1_85 = arith.constant 1 : index
    %c0_86 = arith.constant 0 : index
    %c0_87 = arith.constant 0 : index
    %226 = vector.load %arg3[%c1_85, %c0_86, %c0_87] : memref<2x32x96xf32, #tpu.memory_space<vmem>>, vector<1x32x96xf32>
    %227 = vector.shape_cast %226 : vector<1x32x96xf32> to vector<32x96xf32>
    %228 = arith.truncf %225 : vector<16x32xf32> to vector<16x32xbf16>
    %229 = arith.truncf %227 : vector<32x96xf32> to vector<32x96xbf16>
    %cst_88 = arith.constant dense<0.000000e+00> : vector<16x96xf32>
    %230 = tpu.matmul %228, %229, %cst_88 {dimension_numbers = #tpu.dot_dimension_numbers<[1], [0], [0], [1], [0, 0, 1, 1], [], []>} : vector<16x32xbf16>, vector<32x96xbf16>, vector<16x96xf32> -> vector<16x96xf32>
    %c1_89 = arith.constant 1 : index
    %c0_90 = arith.constant 0 : index
    %c0_91 = arith.constant 0 : index
    %231 = vector.load %arg4[%c1_89, %c0_90, %c0_91] : memref<2x1x96xf32, #tpu.memory_space<vmem>>, vector<1x1x96xf32>
    %232 = vector.shape_cast %231 : vector<1x1x96xf32> to vector<1x96xf32>
    %233 = vector.broadcast %232 : vector<1x96xf32> to vector<16x96xf32>
    %234 = arith.addf %230, %233 : vector<16x96xf32>
    %235 = vector.extract_strided_slice %234 {offsets = [0, 0], sizes = [16, 32], strides = [1, 1]} : vector<16x96xf32> to vector<16x32xf32>
    %cst_92 = arith.constant 0.353553385 : f32
    %236 = vector.broadcast %cst_92 : f32 to vector<16x32xf32>
    %237 = arith.mulf %235, %236 : vector<16x32xf32>
    %238 = vector.extract_strided_slice %234 {offsets = [0, 32], sizes = [16, 32], strides = [1, 1]} : vector<16x96xf32> to vector<16x32xf32>
    %239 = vector.extract_strided_slice %234 {offsets = [0, 64], sizes = [16, 32], strides = [1, 1]} : vector<16x96xf32> to vector<16x32xf32>
    %240 = vector.shape_cast %237 : vector<16x32xf32> to vector<2x8x32xf32>
    %241 = arith.truncf %240 : vector<2x8x32xf32> to vector<2x8x32xbf16>
    %242 = vector.shape_cast %238 : vector<16x32xf32> to vector<2x8x32xf32>
    %243 = arith.truncf %242 : vector<2x8x32xf32> to vector<2x8x32xbf16>
    %244 = vector.shape_cast %239 : vector<16x32xf32> to vector<2x8x32xf32>
    %245 = arith.truncf %244 : vector<2x8x32xf32> to vector<2x8x32xbf16>
    %246 = vector.extract_strided_slice %241 {offsets = [0, 0, 0], sizes = [2, 8, 8], strides = [1, 1, 1]} : vector<2x8x32xbf16> to vector<2x8x8xbf16>
    %247 = vector.extract_strided_slice %243 {offsets = [0, 0, 0], sizes = [2, 8, 8], strides = [1, 1, 1]} : vector<2x8x32xbf16> to vector<2x8x8xbf16>
    "tpu.trace_start"() <{level = 10 : i32, message = "bqd,bkd->bqk"}> : () -> ()
    %cst_93 = arith.constant dense<0.000000e+00> : vector<2x8x8xf32>
    %248 = tpu.matmul %246, %247, %cst_93 {dimension_numbers = #tpu.dot_dimension_numbers<[2], [2], [1], [1], [0, 0, 0, 1, 1, 1], [0], [0]>} : vector<2x8x8xbf16>, vector<2x8x8xbf16>, vector<2x8x8xf32> -> vector<2x8x8xf32>
    "tpu.trace_stop"() : () -> ()
    %cst_94 = arith.constant dense<0xFF800000> : vector<2x8xf32>
    %249 = vector.multi_reduction <maximumf>, %248, %cst_94 [2] : vector<2x8x8xf32> to vector<2x8xf32>
    %250 = vector.shape_cast %249 : vector<2x8xf32> to vector<2x8x1xf32>
    %251 = vector.broadcast %250 : vector<2x8x1xf32> to vector<2x8x8xf32>
    %252 = arith.subf %248, %251 : vector<2x8x8xf32>
    %253 = math.exp %252 : vector<2x8x8xf32>
    %cst_95 = arith.constant dense<0.000000e+00> : vector<2x8xf32>
    %254 = vector.multi_reduction <add>, %253, %cst_95 [2] : vector<2x8x8xf32> to vector<2x8xf32>
    %255 = vector.shape_cast %254 : vector<2x8xf32> to vector<2x8x1xf32>
    %256 = tpu.reciprocal %255 {approx = true} : vector<2x8x1xf32> -> vector<2x8x1xf32>
    %257 = arith.mulf %255, %256 : vector<2x8x1xf32>
    %cst_96 = arith.constant 2.000000e+00 : f32
    %258 = vector.broadcast %cst_96 : f32 to vector<2x8x1xf32>
    %259 = arith.subf %258, %257 : vector<2x8x1xf32>
    %260 = arith.mulf %256, %259 : vector<2x8x1xf32>
    %261 = vector.broadcast %260 : vector<2x8x1xf32> to vector<2x8x8xf32>
    %262 = arith.mulf %253, %261 : vector<2x8x8xf32>
    %263 = arith.truncf %262 : vector<2x8x8xf32> to vector<2x8x8xbf16>
    %264 = vector.extract_strided_slice %245 {offsets = [0, 0, 0], sizes = [2, 8, 8], strides = [1, 1, 1]} : vector<2x8x32xbf16> to vector<2x8x8xbf16>
    "tpu.trace_start"() <{level = 10 : i32, message = "bqk,bkd->bqd"}> : () -> ()
    %cst_97 = arith.constant dense<0.000000e+00> : vector<2x8x8xf32>
    %265 = tpu.matmul %263, %264, %cst_97 {dimension_numbers = #tpu.dot_dimension_numbers<[2], [1], [1], [2], [0, 0, 0, 1, 1, 2], [0], [0]>} : vector<2x8x8xbf16>, vector<2x8x8xbf16>, vector<2x8x8xf32> -> vector<2x8x8xf32>
    "tpu.trace_stop"() : () -> ()
    %266 = vector.shape_cast %265 : vector<2x8x8xf32> to vector<16x8xf32>
    %267 = vector.extract_strided_slice %241 {offsets = [0, 0, 8], sizes = [2, 8, 8], strides = [1, 1, 1]} : vector<2x8x32xbf16> to vector<2x8x8xbf16>
    %268 = vector.extract_strided_slice %243 {offsets = [0, 0, 8], sizes = [2, 8, 8], strides = [1, 1, 1]} : vector<2x8x32xbf16> to vector<2x8x8xbf16>
    "tpu.trace_start"() <{level = 10 : i32, message = "bqd,bkd->bqk"}> : () -> ()
    %cst_98 = arith.constant dense<0.000000e+00> : vector<2x8x8xf32>
    %269 = tpu.matmul %267, %268, %cst_98 {dimension_numbers = #tpu.dot_dimension_numbers<[2], [2], [1], [1], [0, 0, 0, 1, 1, 1], [0], [0]>} : vector<2x8x8xbf16>, vector<2x8x8xbf16>, vector<2x8x8xf32> -> vector<2x8x8xf32>
    "tpu.trace_stop"() : () -> ()
    %cst_99 = arith.constant dense<0xFF800000> : vector<2x8xf32>
    %270 = vector.multi_reduction <maximumf>, %269, %cst_99 [2] : vector<2x8x8xf32> to vector<2x8xf32>
    %271 = vector.shape_cast %270 : vector<2x8xf32> to vector<2x8x1xf32>
    %272 = vector.broadcast %271 : vector<2x8x1xf32> to vector<2x8x8xf32>
    %273 = arith.subf %269, %272 : vector<2x8x8xf32>
    %274 = math.exp %273 : vector<2x8x8xf32>
    %cst_100 = arith.constant dense<0.000000e+00> : vector<2x8xf32>
    %275 = vector.multi_reduction <add>, %274, %cst_100 [2] : vector<2x8x8xf32> to vector<2x8xf32>
    %276 = vector.shape_cast %275 : vector<2x8xf32> to vector<2x8x1xf32>
    %277 = tpu.reciprocal %276 {approx = true} : vector<2x8x1xf32> -> vector<2x8x1xf32>
    %278 = arith.mulf %276, %277 : vector<2x8x1xf32>
    %cst_101 = arith.constant 2.000000e+00 : f32
    %279 = vector.broadcast %cst_101 : f32 to vector<2x8x1xf32>
    %280 = arith.subf %279, %278 : vector<2x8x1xf32>
    %281 = arith.mulf %277, %280 : vector<2x8x1xf32>
    %282 = vector.broadcast %281 : vector<2x8x1xf32> to vector<2x8x8xf32>
    %283 = arith.mulf %274, %282 : vector<2x8x8xf32>
    %284 = arith.truncf %283 : vector<2x8x8xf32> to vector<2x8x8xbf16>
    %285 = vector.extract_strided_slice %245 {offsets = [0, 0, 8], sizes = [2, 8, 8], strides = [1, 1, 1]} : vector<2x8x32xbf16> to vector<2x8x8xbf16>
    "tpu.trace_start"() <{level = 10 : i32, message = "bqk,bkd->bqd"}> : () -> ()
    %cst_102 = arith.constant dense<0.000000e+00> : vector<2x8x8xf32>
    %286 = tpu.matmul %284, %285, %cst_102 {dimension_numbers = #tpu.dot_dimension_numbers<[2], [1], [1], [2], [0, 0, 0, 1, 1, 2], [0], [0]>} : vector<2x8x8xbf16>, vector<2x8x8xbf16>, vector<2x8x8xf32> -> vector<2x8x8xf32>
    "tpu.trace_stop"() : () -> ()
    %287 = vector.shape_cast %286 : vector<2x8x8xf32> to vector<16x8xf32>
    %288 = vector.extract_strided_slice %241 {offsets = [0, 0, 16], sizes = [2, 8, 8], strides = [1, 1, 1]} : vector<2x8x32xbf16> to vector<2x8x8xbf16>
    %289 = vector.extract_strided_slice %243 {offsets = [0, 0, 16], sizes = [2, 8, 8], strides = [1, 1, 1]} : vector<2x8x32xbf16> to vector<2x8x8xbf16>
    "tpu.trace_start"() <{level = 10 : i32, message = "bqd,bkd->bqk"}> : () -> ()
    %cst_103 = arith.constant dense<0.000000e+00> : vector<2x8x8xf32>
    %290 = tpu.matmul %288, %289, %cst_103 {dimension_numbers = #tpu.dot_dimension_numbers<[2], [2], [1], [1], [0, 0, 0, 1, 1, 1], [0], [0]>} : vector<2x8x8xbf16>, vector<2x8x8xbf16>, vector<2x8x8xf32> -> vector<2x8x8xf32>
    "tpu.trace_stop"() : () -> ()
    %cst_104 = arith.constant dense<0xFF800000> : vector<2x8xf32>
    %291 = vector.multi_reduction <maximumf>, %290, %cst_104 [2] : vector<2x8x8xf32> to vector<2x8xf32>
    %292 = vector.shape_cast %291 : vector<2x8xf32> to vector<2x8x1xf32>
    %293 = vector.broadcast %292 : vector<2x8x1xf32> to vector<2x8x8xf32>
    %294 = arith.subf %290, %293 : vector<2x8x8xf32>
    %295 = math.exp %294 : vector<2x8x8xf32>
    %cst_105 = arith.constant dense<0.000000e+00> : vector<2x8xf32>
    %296 = vector.multi_reduction <add>, %295, %cst_105 [2] : vector<2x8x8xf32> to vector<2x8xf32>
    %297 = vector.shape_cast %296 : vector<2x8xf32> to vector<2x8x1xf32>
    %298 = tpu.reciprocal %297 {approx = true} : vector<2x8x1xf32> -> vector<2x8x1xf32>
    %299 = arith.mulf %297, %298 : vector<2x8x1xf32>
    %cst_106 = arith.constant 2.000000e+00 : f32
    %300 = vector.broadcast %cst_106 : f32 to vector<2x8x1xf32>
    %301 = arith.subf %300, %299 : vector<2x8x1xf32>
    %302 = arith.mulf %298, %301 : vector<2x8x1xf32>
    %303 = vector.broadcast %302 : vector<2x8x1xf32> to vector<2x8x8xf32>
    %304 = arith.mulf %295, %303 : vector<2x8x8xf32>
    %305 = arith.truncf %304 : vector<2x8x8xf32> to vector<2x8x8xbf16>
    %306 = vector.extract_strided_slice %245 {offsets = [0, 0, 16], sizes = [2, 8, 8], strides = [1, 1, 1]} : vector<2x8x32xbf16> to vector<2x8x8xbf16>
    "tpu.trace_start"() <{level = 10 : i32, message = "bqk,bkd->bqd"}> : () -> ()
    %cst_107 = arith.constant dense<0.000000e+00> : vector<2x8x8xf32>
    %307 = tpu.matmul %305, %306, %cst_107 {dimension_numbers = #tpu.dot_dimension_numbers<[2], [1], [1], [2], [0, 0, 0, 1, 1, 2], [0], [0]>} : vector<2x8x8xbf16>, vector<2x8x8xbf16>, vector<2x8x8xf32> -> vector<2x8x8xf32>
    "tpu.trace_stop"() : () -> ()
    %308 = vector.shape_cast %307 : vector<2x8x8xf32> to vector<16x8xf32>
    %309 = vector.extract_strided_slice %241 {offsets = [0, 0, 24], sizes = [2, 8, 8], strides = [1, 1, 1]} : vector<2x8x32xbf16> to vector<2x8x8xbf16>
    %310 = vector.extract_strided_slice %243 {offsets = [0, 0, 24], sizes = [2, 8, 8], strides = [1, 1, 1]} : vector<2x8x32xbf16> to vector<2x8x8xbf16>
    "tpu.trace_start"() <{level = 10 : i32, message = "bqd,bkd->bqk"}> : () -> ()
    %cst_108 = arith.constant dense<0.000000e+00> : vector<2x8x8xf32>
    %311 = tpu.matmul %309, %310, %cst_108 {dimension_numbers = #tpu.dot_dimension_numbers<[2], [2], [1], [1], [0, 0, 0, 1, 1, 1], [0], [0]>} : vector<2x8x8xbf16>, vector<2x8x8xbf16>, vector<2x8x8xf32> -> vector<2x8x8xf32>
    "tpu.trace_stop"() : () -> ()
    %cst_109 = arith.constant dense<0xFF800000> : vector<2x8xf32>
    %312 = vector.multi_reduction <maximumf>, %311, %cst_109 [2] : vector<2x8x8xf32> to vector<2x8xf32>
    %313 = vector.shape_cast %312 : vector<2x8xf32> to vector<2x8x1xf32>
    %314 = vector.broadcast %313 : vector<2x8x1xf32> to vector<2x8x8xf32>
    %315 = arith.subf %311, %314 : vector<2x8x8xf32>
    %316 = math.exp %315 : vector<2x8x8xf32>
    %cst_110 = arith.constant dense<0.000000e+00> : vector<2x8xf32>
    %317 = vector.multi_reduction <add>, %316, %cst_110 [2] : vector<2x8x8xf32> to vector<2x8xf32>
    %318 = vector.shape_cast %317 : vector<2x8xf32> to vector<2x8x1xf32>
    %319 = tpu.reciprocal %318 {approx = true} : vector<2x8x1xf32> -> vector<2x8x1xf32>
    %320 = arith.mulf %318, %319 : vector<2x8x1xf32>
    %cst_111 = arith.constant 2.000000e+00 : f32
    %321 = vector.broadcast %cst_111 : f32 to vector<2x8x1xf32>
    %322 = arith.subf %321, %320 : vector<2x8x1xf32>
    %323 = arith.mulf %319, %322 : vector<2x8x1xf32>
    %324 = vector.broadcast %323 : vector<2x8x1xf32> to vector<2x8x8xf32>
    %325 = arith.mulf %316, %324 : vector<2x8x8xf32>
    %326 = arith.truncf %325 : vector<2x8x8xf32> to vector<2x8x8xbf16>
    %327 = vector.extract_strided_slice %245 {offsets = [0, 0, 24], sizes = [2, 8, 8], strides = [1, 1, 1]} : vector<2x8x32xbf16> to vector<2x8x8xbf16>
    "tpu.trace_start"() <{level = 10 : i32, message = "bqk,bkd->bqd"}> : () -> ()
    %cst_112 = arith.constant dense<0.000000e+00> : vector<2x8x8xf32>
    %328 = tpu.matmul %326, %327, %cst_112 {dimension_numbers = #tpu.dot_dimension_numbers<[2], [1], [1], [2], [0, 0, 0, 1, 1, 2], [0], [0]>} : vector<2x8x8xbf16>, vector<2x8x8xbf16>, vector<2x8x8xf32> -> vector<2x8x8xf32>
    "tpu.trace_stop"() : () -> ()
    %329 = vector.shape_cast %328 : vector<2x8x8xf32> to vector<16x8xf32>
    %330 = tpu.concatenate %266, %287, %308, %329 in 1 : vector<16x8xf32>, vector<16x8xf32>, vector<16x8xf32>, vector<16x8xf32> -> vector<16x32xf32>
    %c1_113 = arith.constant 1 : index
    %c0_114 = arith.constant 0 : index
    %c0_115 = arith.constant 0 : index
    %331 = vector.load %arg5[%c1_113, %c0_114, %c0_115] : memref<2x32x32xf32, #tpu.memory_space<vmem>>, vector<1x32x32xf32>
    %332 = vector.shape_cast %331 : vector<1x32x32xf32> to vector<32x32xf32>
    %333 = arith.truncf %330 : vector<16x32xf32> to vector<16x32xbf16>
    %334 = arith.truncf %332 : vector<32x32xf32> to vector<32x32xbf16>
    %cst_116 = arith.constant dense<0.000000e+00> : vector<16x32xf32>
    %335 = tpu.matmul %333, %334, %cst_116 {dimension_numbers = #tpu.dot_dimension_numbers<[1], [0], [0], [1], [0, 0, 1, 1], [], []>} : vector<16x32xbf16>, vector<32x32xbf16>, vector<16x32xf32> -> vector<16x32xf32>
    %336 = arith.addf %199, %335 : vector<16x32xf32>
    %c1_117 = arith.constant 1 : index
    %c0_118 = arith.constant 0 : index
    %c0_119 = arith.constant 0 : index
    %337 = vector.load %arg6[%c1_117, %c0_118, %c0_119] : memref<2x1x32xf32, #tpu.memory_space<vmem>>, vector<1x1x32xf32>
    %338 = vector.shape_cast %337 : vector<1x1x32xf32> to vector<1x32xf32>
    %339 = vector.broadcast %338 : vector<1x32xf32> to vector<16x32xf32>
    %340 = arith.addf %336, %339 : vector<16x32xf32>
    %c1_120 = arith.constant 1 : index
    %c0_121 = arith.constant 0 : index
    %c0_122 = arith.constant 0 : index
    %341 = vector.load %arg7[%c1_120, %c0_121, %c0_122] : memref<2x1x32xf32, #tpu.memory_space<vmem>>, vector<1x1x32xf32>
    %342 = vector.shape_cast %341 : vector<1x1x32xf32> to vector<1x32xf32>
    %c1_123 = arith.constant 1 : index
    %c0_124 = arith.constant 0 : index
    %c0_125 = arith.constant 0 : index
    %343 = vector.load %arg8[%c1_123, %c0_124, %c0_125] : memref<2x1x32xf32, #tpu.memory_space<vmem>>, vector<1x1x32xf32>
    %344 = vector.shape_cast %343 : vector<1x1x32xf32> to vector<1x32xf32>
    %cst_126 = arith.constant dense<0.000000e+00> : vector<16xf32>
    %345 = vector.multi_reduction <add>, %340, %cst_126 [1] : vector<16x32xf32> to vector<16xf32>
    %346 = vector.shape_cast %345 : vector<16xf32> to vector<16x1xf32>
    %cst_127 = arith.constant 3.200000e+01 : f32
    %347 = vector.broadcast %cst_127 : f32 to vector<16x1xf32>
    %348 = arith.divf %346, %347 : vector<16x1xf32>
    %349 = vector.broadcast %348 : vector<16x1xf32> to vector<16x32xf32>
    %350 = arith.subf %340, %349 : vector<16x32xf32>
    %351 = arith.mulf %350, %350 : vector<16x32xf32>
    %cst_128 = arith.constant dense<0.000000e+00> : vector<16xf32>
    %352 = vector.multi_reduction <add>, %351, %cst_128 [1] : vector<16x32xf32> to vector<16xf32>
    %353 = vector.shape_cast %352 : vector<16xf32> to vector<16x1xf32>
    %cst_129 = arith.constant 3.200000e+01 : f32
    %354 = vector.broadcast %cst_129 : f32 to vector<16x1xf32>
    %355 = arith.divf %353, %354 : vector<16x1xf32>
    %356 = vector.broadcast %348 : vector<16x1xf32> to vector<16x32xf32>
    %357 = arith.subf %340, %356 : vector<16x32xf32>
    %cst_130 = arith.constant 9.99999997E-7 : f32
    %358 = vector.broadcast %cst_130 : f32 to vector<16x1xf32>
    %359 = arith.addf %355, %358 : vector<16x1xf32>
    %360 = math.rsqrt %359 : vector<16x1xf32>
    %361 = vector.broadcast %360 : vector<16x1xf32> to vector<16x32xf32>
    %362 = arith.mulf %357, %361 : vector<16x32xf32>
    %363 = vector.broadcast %342 : vector<1x32xf32> to vector<16x32xf32>
    %364 = arith.mulf %362, %363 : vector<16x32xf32>
    %365 = vector.broadcast %344 : vector<1x32xf32> to vector<16x32xf32>
    %366 = arith.addf %364, %365 : vector<16x32xf32>
    %c1_131 = arith.constant 1 : index
    %c0_132 = arith.constant 0 : index
    %c0_133 = arith.constant 0 : index
    %367 = vector.load %arg9[%c1_131, %c0_132, %c0_133] : memref<2x32x64xf32, #tpu.memory_space<vmem>>, vector<1x32x64xf32>
    %368 = vector.shape_cast %367 : vector<1x32x64xf32> to vector<32x64xf32>
    %369 = arith.truncf %366 : vector<16x32xf32> to vector<16x32xbf16>
    %370 = arith.truncf %368 : vector<32x64xf32> to vector<32x64xbf16>
    %cst_134 = arith.constant dense<0.000000e+00> : vector<16x64xf32>
    %371 = tpu.matmul %369, %370, %cst_134 {dimension_numbers = #tpu.dot_dimension_numbers<[1], [0], [0], [1], [0, 0, 1, 1], [], []>} : vector<16x32xbf16>, vector<32x64xbf16>, vector<16x64xf32> -> vector<16x64xf32>
    %c1_135 = arith.constant 1 : index
    %c0_136 = arith.constant 0 : index
    %c0_137 = arith.constant 0 : index
    %372 = vector.load %arg10[%c1_135, %c0_136, %c0_137] : memref<2x1x64xf32, #tpu.memory_space<vmem>>, vector<1x1x64xf32>
    %373 = vector.shape_cast %372 : vector<1x1x64xf32> to vector<1x64xf32>
    %374 = vector.broadcast %373 : vector<1x64xf32> to vector<16x64xf32>
    %375 = arith.addf %371, %374 : vector<16x64xf32>
    %376 = arith.mulf %375, %375 : vector<16x64xf32>
    %377 = arith.mulf %375, %376 : vector<16x64xf32>
    %cst_138 = arith.constant 4.471500e-02 : f32
    %378 = vector.broadcast %cst_138 : f32 to vector<16x64xf32>
    %379 = arith.mulf %378, %377 : vector<16x64xf32>
    %380 = arith.addf %375, %379 : vector<16x64xf32>
    %cst_139 = arith.constant 0.797884583 : f32
    %381 = vector.broadcast %cst_139 : f32 to vector<16x64xf32>
    %382 = arith.mulf %381, %380 : vector<16x64xf32>
    %383 = math.tanh %382 : vector<16x64xf32>
    %cst_140 = arith.constant 1.000000e+00 : f32
    %384 = vector.broadcast %cst_140 : f32 to vector<16x64xf32>
    %385 = arith.addf %384, %383 : vector<16x64xf32>
    %cst_141 = arith.constant 5.000000e-01 : f32
    %386 = vector.broadcast %cst_141 : f32 to vector<16x64xf32>
    %387 = arith.mulf %386, %385 : vector<16x64xf32>
    %388 = arith.mulf %375, %387 : vector<16x64xf32>
    %c1_142 = arith.constant 1 : index
    %c0_143 = arith.constant 0 : index
    %c0_144 = arith.constant 0 : index
    %389 = vector.load %arg11[%c1_142, %c0_143, %c0_144] : memref<2x64x32xf32, #tpu.memory_space<vmem>>, vector<1x64x32xf32>
    %390 = vector.shape_cast %389 : vector<1x64x32xf32> to vector<64x32xf32>
    %391 = arith.truncf %388 : vector<16x64xf32> to vector<16x64xbf16>
    %392 = arith.truncf %390 : vector<64x32xf32> to vector<64x32xbf16>
    %cst_145 = arith.constant dense<0.000000e+00> : vector<16x32xf32>
    %393 = tpu.matmul %391, %392, %cst_145 {dimension_numbers = #tpu.dot_dimension_numbers<[1], [0], [0], [1], [0, 0, 1, 1], [], []>} : vector<16x64xbf16>, vector<64x32xbf16>, vector<16x32xf32> -> vector<16x32xf32>
    %394 = arith.addf %340, %393 : vector<16x32xf32>
    %c1_146 = arith.constant 1 : index
    %c0_147 = arith.constant 0 : index
    %c0_148 = arith.constant 0 : index
    %395 = vector.load %arg12[%c1_146, %c0_147, %c0_148] : memref<2x1x32xf32, #tpu.memory_space<vmem>>, vector<1x1x32xf32>
    %396 = vector.shape_cast %395 : vector<1x1x32xf32> to vector<1x32xf32>
    %397 = vector.broadcast %396 : vector<1x32xf32> to vector<16x32xf32>
    %398 = arith.addf %394, %397 : vector<16x32xf32>
    %c0_149 = arith.constant 0 : index
    %c0_150 = arith.constant 0 : index
    %399 = vector.load %arg13[%c0_149, %c0_150] : memref<1x32xf32, #tpu.memory_space<vmem>>, vector<1x32xf32>
    %c0_151 = arith.constant 0 : index
    %c0_152 = arith.constant 0 : index
    %400 = vector.load %arg14[%c0_151, %c0_152] : memref<1x32xf32, #tpu.memory_space<vmem>>, vector<1x32xf32>
    %cst_153 = arith.constant dense<0.000000e+00> : vector<16xf32>
    %401 = vector.multi_reduction <add>, %398, %cst_153 [1] : vector<16x32xf32> to vector<16xf32>
    %402 = vector.shape_cast %401 : vector<16xf32> to vector<16x1xf32>
    %cst_154 = arith.constant 3.200000e+01 : f32
    %403 = vector.broadcast %cst_154 : f32 to vector<16x1xf32>
    %404 = arith.divf %402, %403 : vector<16x1xf32>
    %405 = vector.broadcast %404 : vector<16x1xf32> to vector<16x32xf32>
    %406 = arith.subf %398, %405 : vector<16x32xf32>
    %407 = arith.mulf %406, %406 : vector<16x32xf32>
    %cst_155 = arith.constant dense<0.000000e+00> : vector<16xf32>
    %408 = vector.multi_reduction <add>, %407, %cst_155 [1] : vector<16x32xf32> to vector<16xf32>
    %409 = vector.shape_cast %408 : vector<16xf32> to vector<16x1xf32>
    %cst_156 = arith.constant 3.200000e+01 : f32
    %410 = vector.broadcast %cst_156 : f32 to vector<16x1xf32>
    %411 = arith.divf %409, %410 : vector<16x1xf32>
    %412 = vector.broadcast %404 : vector<16x1xf32> to vector<16x32xf32>
    %413 = arith.subf %398, %412 : vector<16x32xf32>
    %cst_157 = arith.constant 9.99999997E-7 : f32
    %414 = vector.broadcast %cst_157 : f32 to vector<16x1xf32>
    %415 = arith.addf %411, %414 : vector<16x1xf32>
    %416 = math.rsqrt %415 : vector<16x1xf32>
    %417 = vector.broadcast %416 : vector<16x1xf32> to vector<16x32xf32>
    %418 = arith.mulf %413, %417 : vector<16x32xf32>
    %419 = vector.broadcast %399 : vector<1x32xf32> to vector<16x32xf32>
    %420 = arith.mulf %418, %419 : vector<16x32xf32>
    %421 = vector.broadcast %400 : vector<1x32xf32> to vector<16x32xf32>
    %422 = arith.addf %420, %421 : vector<16x32xf32>
    %c0_158 = arith.constant 0 : index
    %c0_159 = arith.constant 0 : index
    %423 = vector.load %arg15[%c0_158, %c0_159] : memref<16x32xf32, #tpu.memory_space<vmem>>, vector<16x32xf32>
    tpu.vector_store %arg15[%c0_158, %c0_159], %422 {strides = array<i32>} : memref<16x32xf32, #tpu.memory_space<vmem>>, vector<16x32xf32>,
    return
  }
}

</mosaic_0001>

<bundles_post_ra>
// kernel: encoder_forward.1
= control target key start
LH: loop header
LB: loop body
LE: loop exit
PB: predicated region body
PF: predicated region fallthrough
CT: control target
= control target key end

     0   :  { %20 = vsyncpa [#allocation3], 0  ;;  %s4218_s0 = inlined_call_operand.hbm [shape: f32[16,32], index: 0, kind: input, shape index: {}]   ;;  %s4219_s1 = inlined_call_operand.vmem [shape: f32[2,1,32], index: 1, kind: input, shape index: {}]   ;;  %s4220_s2 = inlined_call_operand.vmem [shape: f32[2,1,32], index: 2, kind: input, shape index: {}]   ;;  %s4221_s3 = inlined_call_operand.vmem [shape: f32[2,32,96], index: 3, kind: input, shape index: {}]   ;;  %s4222_s4 = inlined_call_operand.vmem [shape: f32[2,1,96], index: 4, kind: input, shape index: {}]   ;;  %s4223_s5 = inlined_call_operand.vmem [shape: f32[2,32,32], index: 5, kind: input, shape index: {}]   ;;  %s4224_s6 = inlined_call_operand.vmem [shape: f32[2,1,32], index: 6, kind: input, shape index: {}]   ;;  %s4225_s7 = inlined_call_operand.vmem [shape: f32[2,1,32], index: 7, kind: input, shape index: {}]   ;;  %s4226_s8 = inlined_call_operand.vmem [shape: f32[2,1,32], index: 8, kind: input, shape index: {}]   ;;  %s4227_s9 = inlined_call_operand.vmem [shape: f32[2,32,64], index: 9, kind: input, shape index: {}]   ;;  %s4228_s10 = inlined_call_operand.hbm [shape: f32[2,1,64], index: 10, kind: input, shape index: {}]   ;;  %s4229_s11 = inlined_call_operand.vmem [shape: f32[2,64,32], index: 11, kind: input, shape index: {}]   ;;  %s4230_s12 = inlined_call_operand.hbm [shape: f32[2,1,32], index: 12, kind: input, shape index: {}]   ;;  %s4231_s13 = inlined_call_operand.vmem [shape: f32[1,32], index: 13, kind: input, shape index: {}]   ;;  %s4232_s14 = inlined_call_operand.vmem [shape: f32[1,32], index: 14, kind: input, shape index: {}]   ;;  %s4233_s15 = inlined_call_operand.hbm [shape: f32[16,32], index: 15, kind: output, shape index: {}]  }
   0x1   :  { %21 = vsyncpa [#allocation6], 0 }
   0x2   :  { %22 = vsyncpa [#allocation4], 0  ;;  %s3440_s18 = smov [#allocation5]   ;;  %s3346_s22 = scalar_lea.hbm %s4228_s10, 32 }
   0x3   :  { %s58_s19 = sshll.u32 %s3440_s18, 4  ;;  %p3347_p0 = scmp.ne.s32.totalorder %s4228_s10, %s3346_s22  ;;  %s59_s19 = int_to_ptr.vmem [resolvable:$true] %s58_s19 }
   0x4   :  { %p3350_p1 = scmp.lt.u32.totalorder %s3346_s22, %s4228_s10 }
   0x6   :  { %p3352_p2 = pnand %p3350_p1, %p3347_p0 }
   0x8   :  { %3355 = shalt.err (!%p3352_p2)
}
   0x9   :  { %s3356_s27 = scalar_lea.vmem %s59_s19, 32  ;;  %p3361_p4 = scmp.lt.s32.totalorder %s59_s19, %s59_s19 }
   0xa   :  { %p3357_p3 = scmp.ne.s32.totalorder %s59_s19, %s3356_s27  ;;  %p3362_p5 = scmp.lt.s32.totalorder %s3356_s27, %s3356_s27 }
   0xc   :  { %p3363_p6 = por %p3362_p5, %p3361_p4 }
   0xe   :  { %p3364_p7 = pnand %p3363_p6, %p3357_p3 }
  0x10   :  { %3367 = shalt.err (!%p3364_p7)
}
  0x11   :  { %s4234_s28 = smov 16   ;;  %s3442_s29 = smov 1  }
  0x12   :  { %64 = dma.hbm_to_vmem [thread:$0]  %s4228_s10, 32, %s59_s19, [#allocation6], %s4234_s28, %s4234_s28, %s3442_s29  }
  0x13   :  { %s3443_s17 = smov [#allocation2]   ;;  %s3368_s22 = scalar_lea.hbm %s4218_s0, 256 }
  0x14   :  { %s28_s18 = sshll.u32 %s3443_s17, 4  ;;  %p3369_p8 = scmp.ne.s32.totalorder %s4218_s0, %s3368_s22  ;;  %s29_s18 = int_to_ptr.vmem [resolvable:$true] %s28_s18 }
  0x15   :  { %p3372_p9 = scmp.lt.u32.totalorder %s3368_s22, %s4218_s0 }
  0x17   :  { %p3374_p10 = pnand %p3372_p9, %p3369_p8 }
  0x19   :  { %3377 = shalt.err (!%p3374_p10)
}
  0x1a   :  { %s3378_s27 = scalar_lea.vmem %s29_s18, 256  ;;  %p3383_p12 = scmp.lt.s32.totalorder %s29_s18, %s29_s18 }
  0x1b   :  { %p3379_p11 = scmp.ne.s32.totalorder %s29_s18, %s3378_s27  ;;  %p3384_p13 = scmp.lt.s32.totalorder %s3378_s27, %s3378_s27 }
  0x1d   :  { %p3385_p0 = por %p3384_p13, %p3383_p12 }
  0x1f   :  { %p3386_p1 = pnand %p3385_p0, %p3379_p11 }
  0x21   :  { %3389 = shalt.err (!%p3386_p1)
}
  0x22   :  { %s4236_s10 = smov 128   ;;  %s4237_s19 = smov 8  }
  0x23   :  { %34 = dma.hbm_to_vmem [thread:$0]  %s4218_s0, 256, %s29_s18, [#allocation3], %s4236_s10, %s4236_s10, %s4237_s19  }
  0x24   :  { %s3446_s17 = smov [#allocation7]   ;;  %s3390_s23 = scalar_lea.hbm %s4230_s12, 32 }
  0x25   :  { %s72_s20 = sshll.u32 %s3446_s17, 4  ;;  %p3391_p2 = scmp.ne.s32.totalorder %s4230_s12, %s3390_s23  ;;  %s73_s20 = int_to_ptr.vmem [resolvable:$true] %s72_s20 }
  0x26   :  { %p3394_p3 = scmp.lt.u32.totalorder %s3390_s23, %s4230_s12 }
  0x28   :  { %p3396_p4 = pnand %p3394_p3, %p3391_p2 }
  0x2a   :  { %3399 = shalt.err (!%p3396_p4)
}
  0x2b   :  { %s3400_s28 = scalar_lea.vmem %s73_s20, 32  ;;  %p3405_p6 = scmp.lt.s32.totalorder %s73_s20, %s73_s20 }
  0x2c   :  { %p3401_p5 = scmp.ne.s32.totalorder %s73_s20, %s3400_s28  ;;  %p3406_p7 = scmp.lt.s32.totalorder %s3400_s28, %s3400_s28 }
  0x2e   :  { %p3407_p8 = por %p3406_p7, %p3405_p6 }
  0x30   :  { %p3408_p9 = pnand %p3407_p8, %p3401_p5 }
  0x32   :  { %3411 = shalt.err (!%p3408_p9)
}
  0x33   :  { %s4244_s0 = smov 16  }
  0x34   :  { %78 = dma.hbm_to_vmem [thread:$0]  %s4230_s12, 32, %s73_s20, [#allocation6], %s4244_s0, %s4244_s0, %s3442_s29  }
  0x35   :  { %3434 = dma.done.wait [#allocation3], 256  }
  0x36   :  { %3435 = vsyncadd [#allocation3], 4294967040 }
  0x37   :  { %3436 = dma.done.wait [#allocation6], 64  }
  0x38   :  { %3437 = vsyncadd [#allocation6], 4294967232  ;;  %vm97_vm0 = vcmask 261120   ;;  %v3587_v0 = vld [vmem:[#allocation2] sm:$0xff]  ;;  %v3589_v1 = vld [vmem:[#allocation2 + $0x8] sm:$0xff]  ;;  %v3447_v17 = vmov 0.0  }
  0x39   :  { %v98_v2 = vsel %vm97_vm0, %v3587_v0, 0.0  ;;  %v101_v3 = vsel %vm97_vm0, %v3589_v1, 0.0  ;;  %v141_v14 = vld [vmem:[%s4221_s3] sm:$0xff]  ;;  %v142_v15 = vld [vmem:[%s4221_s3 + $0x8] sm:$0xff]  ;;  %v143_v16 = vld [vmem:[%s4221_s3 + $0x10] sm:$0xff]  ;;  %2938 = vmatprep.subr.bf16.mxu1 %v3447_v17  ;;  %vm3448_vm1 = vmmov 0   ;;  %2952 = vmatprep.subr.bf16.mxu0 %v3447_v17 }
  0x3a   :  { %99 = vadd.xlane.f32.xlu0 %v98_v2  ;;  %v146_v18 = vpack.c.bf16 %v142_v15, %v141_v14  ;;  %v144_v19 = vld [vmem:[%s4221_s3 + $0x18] sm:$0xff]  ;;  %2942 = vmatprep.mubr.msk.bf16.mxu1 %vm3448_vm1, %v3447_v17  ;;  %v2762_v29 = vld [vmem:[%s4219_s1] ss:$0 sm:$0xff]  ;;  %s3449_s30 = smov 96   ;;  %vm208_vm2 = vcmask 64512   ;;  %s3450_s12 = smov 64  }
  0x3b   :  { %2954 = vmatprep.mubr.msk.bf16.mxu0 %vm3448_vm1, %v3447_v17  ;;  %v147_v20 = vpack.c.bf16 %v144_v19, %v143_v16  ;;  %v2763_v33 = vld [vmem:[%s4220_s2] ss:$0 sm:$0xff]  ;;  %s3451_s28 = smov 88   ;;  %vm339_vm3 = vcmask 1043456   ;;  %s3452_s29 = smov 120   ;;  %vm1137_vm4 = vcmask 130048  }
  0x3c   :  { %2939 = vmatpush3.bf16.msra.mxu1 %v146_v18  ;;  %v2764_v38 = vld [vmem:[%s4222_s4] ss:$0 sm:$0xff]  ;;  %s3453_s16 = smov 56   ;;  %s3454_s17 = smov 80   ;;  %vm1140_vm5 = vcmask 195584   ;;  %vm1338_vm6 = vcmask 523264  }
  0x3d   :  { %2940 = vmatprep.subr.bf16.mxu1 %v3447_v17  ;;  %s3455_s20 = smov 112   ;;  %s3456_s21 = smov 48  }
  0x3e   :  { %102 = vadd.xlane.f32.xlu0 %v101_v3  ;;  %s3457_s22 = smov 72   ;;  %s4241_s23 = smov 104  }
  0x3f   :  { %s4239_s24 = smov 40   ;;  %s4243_s25 = smov 24  }
  0x40   :  { %2941 = vmatpush3.bf16.msra.mxu1 %v147_v20  ;;  %s3461_s18 = smov [#allocation8]  }
  0x41   :  { %2946 = vmatprep.subr.bf16.mxu1 %v3447_v17 }
  0xc7   :  { %v100_v4 = vpop.xlane.xlu0 %99 }
  0xc8   :  { %v105_v5 = vmul.f32 0.03125, %v100_v4 }
  0xca   :  { %v107_v6 = vsub.f32 %v3587_v0, %v105_v5 }
  0xcb   :  { %v103_v7 = vpop.xlane.xlu0 %102 }
  0xcc   :  { %v106_v8 = vmul.f32 0.03125, %v103_v7  ;;  %v109_v9 = vmul.f32 %v107_v6, %v107_v6 }
  0xce   :  { %v108_v10 = vsub.f32 %v3589_v1, %v106_v8  ;;  %v111_v11 = vsel %vm97_vm0, %v109_v9, 0.0 }
  0xcf   :  { %112 = vadd.xlane.f32.xlu1 %v111_v11 }
  0xd0   :  { %v110_v12 = vmul.f32 %v108_v10, %v108_v10 }
  0xd2   :  { %v114_v13 = vsel %vm97_vm0, %v110_v12, 0.0 }
  0xd3   :  { %115 = vadd.xlane.f32.xlu1 %v114_v13 }
 0x15c   :  { %v113_v21 = vpop.xlane.xlu1 %112 }
 0x15d   :  { %v117_v22 = vmul.f32 0.03125, %v113_v21 }
 0x15f   :  { %v119_v23 = vadd.f32 1e-06, %v117_v22 }
 0x160   :  { %v116_v24 = vpop.xlane.xlu1 %115 }
 0x161   :  { %3254 = vrsqrt.f32 %v119_v23  ;;  %v118_v25 = vmul.f32 0.03125, %v116_v24 }
 0x163   :  { %v120_v26 = vadd.f32 1e-06, %v118_v25 }
 0x165   :  { %3256 = vrsqrt.f32 %v120_v26 }
 0x16b   :  { %v3255_v27 = vpop.eup %3254 }
 0x16c   :  { %v123_v28 = vmul.f32 %v3255_v27, %v107_v6 }
 0x16e   :  { %v131_v32 = vmul.f32 %v2762_v29, %v123_v28 }
 0x16f   :  { %v3257_v30 = vpop.eup %3256 }
 0x170   :  { %v124_v31 = vmul.f32 %v3257_v30, %v108_v10  ;;  %v139_v35 = vadd.f32 %v2763_v33, %v131_v32 }
 0x172   :  { %v132_v34 = vmul.f32 %v2762_v29, %v124_v31 }
 0x174   :  { %v140_v36 = vadd.f32 %v2763_v33, %v132_v34 }
 0x176   :  { %v145_v37 = vpack.c.bf16 %v140_v36, %v139_v35 }
 0x178   :  { %2943 = vmatmul.mubr.msk.bf16.vlgmr.msra.gmra.mrb[0].mxu1 %vm97_vm0, %v145_v37 }
 0x179   :  { %2948 = vmatprep.mubr.msk.bf16.mxu1 %vm3448_vm1, %v3447_v17 }
 0x24b   :  { %v192_v39 = vpop.f32.mrb[0].mxu1 }
 0x24c   :  { %v193_v40 = vadd.f32 %v2764_v38, %v192_v39  ;;  %v2944_v41 = vpop.f32.mrb[1].mxu1 }
 0x24d   :  { %v195_v42 = vpop.f32.mrb[2].mxu1 }
 0x24e   :  { %v3631_v43 = vpack.c.bf16 %v193_v40, %v193_v40  ;;  %v196_v44 = vadd.f32 %v2764_v38, %v195_v42  ;;  %v2945_v45 = vpop.f32.mrb[3].mxu1  ;;  %v199_v50 = vmul.f32 0.35355338, %v193_v40 }
 0x250   :  { %v3633_v46 = vpack.c.bf16 %v196_v44, %v196_v44  ;;  %206 = vrot.lane.b32.xlu0 %v3631_v43, %s3449_s30  ;;  %v200_v52 = vmul.f32 0.35355338, %v196_v44  ;;  %v3643_v53 = vpack.c.bf16 %v199_v50, %v199_v50 }
 0x252   :  { %256 = vrot.lane.b32.xlu1 %v3633_v46, %s3449_s30  ;;  %v3645_v54 = vpack.c.bf16 %v200_v52, %v200_v52 }
 0x2c2   :  { %v207_v47 = vpop.permute.xlu0 %206 }
 0x2c3   :  { %v213_v48 = vsel %vm208_vm2, %v207_v47, 0 }
 0x2c4   :  { %2947 = vmatpush3.bf16.xpose.msra.mxu1 %v213_v48  ;;  %v257_v49 = vpop.permute.xlu1 %256 }
 0x2c5   :  { %v262_v51 = vsel %vm208_vm2, %v257_v49, 0  ;;  %2958 = vmatprep.subr.bf16.mxu1 %v3447_v17 }
 0x2c6   :  { %2953 = vmatpush3.bf16.xpose.msra.mxu0 %v262_v51 }
 0x2c7   :  { %2964 = vmatprep.subr.bf16.mxu0 %v3447_v17 }
 0x2cb   :  { %2949 = vmatmul.mubr.msk.bf16.vlgmr.msra.gmra.mrb[4].mxu1 %vm208_vm2, %v3643_v53 }
 0x2cc   :  { %2960 = vmatprep.mubr.msk.bf16.mxu1 %vm3448_vm1, %v3447_v17 }
 0x2cd   :  { %2955 = vmatmul.mubr.msk.bf16.vlgmr.msra.gmra.mrb[0].mxu0 %vm208_vm2, %v3645_v54 }
 0x2ce   :  { %2966 = vmatprep.mubr.msk.bf16.mxu0 %vm3448_vm1, %v3447_v17 }
 0x39e   :  { %v249_v55 = vpop.f32.mrb[4].mxu1 }
 0x39f   :  { %v2950_v56 = vpop.f32.mrb[5].mxu1  ;;  %v304_v57 = vsel %vm208_vm2, %v249_v55, -inf }
 0x3a0   :  { %v298_v58 = vpop.f32.mrb[0].mxu0  ;;  %305 = vmax.xlane.f32.xlu1 %v304_v57  ;;  %v252_v59 = vpop.f32.mrb[6].mxu1 }
 0x3a1   :  { %v2951_v60 = vpop.f32.mrb[7].mxu1  ;;  %v2956_v61 = vpop.f32.mrb[1].mxu0  ;;  %v307_v62 = vsel %vm208_vm2, %v298_v58, -inf }
 0x3a2   :  { %308 = vmax.xlane.f32.xlu0 %v307_v62  ;;  %v301_v63 = vpop.f32.mrb[2].mxu0 }
 0x3a3   :  { %v2957_v2 = vpop.f32.mrb[3].mxu0 }
 0x3b1   :  { %383 = vrot.lane.b32.xlu1 %v3633_v46, %s3450_s12 }
 0x3b5   :  { %434 = vrot.lane.b32.xlu1 %v3631_v43, %s3451_s28 }
 0x42d   :  { %v306_v3 = vpop.xlane.xlu1 %305 }
 0x42e   :  { %v310_v4 = vsub.f32 %v249_v55, %v306_v3 }
 0x42f   :  { %v309_v5 = vpop.xlane.xlu0 %308 }
 0x430   :  { %v312_v6 = vmul.f32 1.442695, %v310_v4  ;;  %v311_v7 = vsub.f32 %v298_v58, %v309_v5 }
 0x431   :  { %v384_v8 = vpop.permute.xlu1 %383 }
 0x432   :  { %3258 = vpow2.f32 %v312_v6  ;;  %v314_v9 = vmul.f32 1.442695, %v311_v7  ;;  %v389_v10 = vsel %vm339_vm3, %v384_v8, 0 }
 0x433   :  { %2965 = vmatpush3.bf16.msra.mxu0 %v389_v10 }
 0x434   :  { %3260 = vpow2.f32 %v314_v9  ;;  %2976 = vmatprep.subr.bf16.mxu0 %v3447_v17 }
 0x435   :  { %v435_v15 = vpop.permute.xlu1 %434 }
 0x436   :  { %v440_v33 = vsel %vm208_vm2, %v435_v15, 0 }
 0x43c   :  { %v3259_v11 = vpop.eup %3258 }
 0x43d   :  { %v316_v12 = vsel %vm208_vm2, %v3259_v11, 0.0 }
 0x43e   :  { %v3261_v13 = vpop.eup %3260  ;;  %317 = vadd.xlane.f32.xlu0 %v316_v12 }
 0x43f   :  { %v319_v14 = vsel %vm208_vm2, %v3261_v13, 0.0 }
 0x440   :  { %320 = vadd.xlane.f32.xlu1 %v319_v14 }
 0x451   :  { %485 = vrot.lane.b32.xlu1 %v3633_v46, %s3451_s28 }
 0x454   :  { %334 = vrot.lane.b32.xlu0 %v3631_v43, %s3450_s12 }
 0x455   :  { %483 = vrot.lane.b32.xlu1 %v3645_v54, %s3452_s29 }
 0x458   :  { %432 = vrot.lane.b32.xlu0 %v3643_v53, %s3452_s29 }
 0x4cb   :  { %v318_v16 = vpop.xlane.xlu0 %317 }
 0x4cc   :  { %3262 = vrcp.f32 %v318_v16 }
 0x4cd   :  { %v321_v18 = vpop.xlane.xlu1 %320 }
 0x4ce   :  { %3264 = vrcp.f32 %v321_v18 }
 0x4cf   :  { %v335_v19 = vpop.permute.xlu0 %334 }
 0x4d0   :  { %v341_v20 = vsel %vm339_vm3, %v335_v19, 0 }
 0x4d1   :  { %2959 = vmatpush3.bf16.msra.mxu1 %v341_v20  ;;  %v486_v32 = vpop.permute.xlu1 %485 }
 0x4d2   :  { %2970 = vmatprep.subr.bf16.mxu1 %v3447_v17  ;;  %v491_v35 = vsel %vm208_vm2, %v486_v32, 0 }
 0x4d3   :  { %v433_v36 = vpop.permute.xlu0 %432 }
 0x4d5   :  { %v484_v37 = vpop.permute.xlu1 %483 }
 0x4d6   :  { %v3263_v21 = vpop.eup %3262 }
 0x4d7   :  { %v324_v22 = vmul.f32 %v3263_v21, %v318_v16 }
 0x4d8   :  { %v3265_v23 = vpop.eup %3264 }
 0x4d9   :  { %v326_v24 = vsub.f32 2.0, %v324_v22  ;;  %v325_v25 = vmul.f32 %v3265_v23, %v321_v18 }
 0x4db   :  { %v328_v26 = vmul.f32 %v3263_v21, %v326_v24  ;;  %v327_v27 = vsub.f32 2.0, %v325_v25 }
 0x4dd   :  { %v330_v28 = vmul.f32 %v3259_v11, %v328_v26  ;;  %v329_v29 = vmul.f32 %v3265_v23, %v327_v27 }
 0x4df   :  { %v332_v30 = vpack.c.bf16 %v330_v28, %v330_v28  ;;  %v331_v31 = vmul.f32 %v3261_v13, %v329_v29 }
 0x4e1   :  { %v333_v34 = vpack.c.bf16 %v331_v31, %v331_v31  ;;  %2961 = vmatmul.mubr.msk.bf16.vlgmr.msra.gmra.mrb[8].mxu1 %vm208_vm2, %v332_v30 }
 0x4e2   :  { %2971 = vmatpush3.bf16.xpose.msra.mxu1 %v440_v33  ;;  %2972 = vmatprep.mubr.msk.bf16.mxu1 %vm3448_vm1, %v3447_v17 }
 0x4e3   :  { %2967 = vmatmul.mubr.msk.bf16.vlgmr.msra.gmra.mrb[4].mxu0 %vm208_vm2, %v333_v34  ;;  %2982 = vmatprep.subr.bf16.mxu1 %v3447_v17 }
 0x4e4   :  { %2977 = vmatpush3.bf16.xpose.msra.mxu0 %v491_v35  ;;  %2978 = vmatprep.mubr.msk.bf16.mxu0 %vm3448_vm1, %v3447_v17 }
 0x4e5   :  { %2988 = vmatprep.subr.bf16.mxu0 %v3447_v17 }
 0x4e9   :  { %2973 = vmatmul.mubr.msk.bf16.vlgmr.msra.gmra.mrb[12].mxu1 %vm208_vm2, %v433_v36 }
 0x4ea   :  { %2984 = vmatprep.mubr.msk.bf16.mxu1 %vm3448_vm1, %v3447_v17 }
 0x4eb   :  { %2979 = vmatmul.mubr.msk.bf16.vlgmr.msra.gmra.mrb[8].mxu0 %vm208_vm2, %v484_v37 }
 0x4ec   :  { %2990 = vmatprep.mubr.msk.bf16.mxu0 %vm3448_vm1, %v3447_v17 }
 0x5b4   :  { %v3691_v38 = vpop.f32.mrb[8].mxu1 }
 0x5b5   :  { %v2962_v39 = vpop.f32.mrb[9].mxu1 }
 0x5b6   :  { %v380_v40 = vpop.f32.mrb[10].mxu1  ;;  %v3693_v41 = vpop.f32.mrb[4].mxu0 }
 0x5b7   :  { %v2963_v42 = vpop.f32.mrb[11].mxu1  ;;  %v2968_v44 = vpop.f32.mrb[5].mxu0 }
 0x5b8   :  { %v428_v45 = vpop.f32.mrb[6].mxu0 }
 0x5b9   :  { %v2969_v47 = vpop.f32.mrb[7].mxu0 }
 0x5bc   :  { %v476_v48 = vpop.f32.mrb[12].mxu1 }
 0x5bd   :  { %v2974_v49 = vpop.f32.mrb[13].mxu1  ;;  %v533_v50 = vsel %vm208_vm2, %v476_v48, -inf }
 0x5be   :  { %v527_v51 = vpop.f32.mrb[8].mxu0  ;;  %534 = vmax.xlane.f32.xlu0 %v533_v50  ;;  %v479_v52 = vpop.f32.mrb[14].mxu1 }
 0x5bf   :  { %v2975_v55 = vpop.f32.mrb[15].mxu1  ;;  %v2980_v56 = vpop.f32.mrb[9].mxu0  ;;  %v536_v57 = vsel %vm208_vm2, %v527_v51, -inf }
 0x5c0   :  { %537 = vmax.xlane.f32.xlu1 %v536_v57  ;;  %v530_v58 = vpop.f32.mrb[10].mxu0 }
 0x5c1   :  { %v2981_v59 = vpop.f32.mrb[11].mxu0 }
 0x5d1   :  { %611 = vrot.lane.b32.xlu1 %v3633_v46, %s3453_s16 }
 0x5d5   :  { %661 = vrot.lane.b32.xlu1 %v3631_v43, %s3454_s17 }
 0x5d9   :  { %711 = vrot.lane.b32.xlu1 %v3633_v46, %s3454_s17 }
 0x5dd   :  { %709 = vrot.lane.b32.xlu1 %v3645_v54, %s3455_s20 }
 0x64b   :  { %v535_v60 = vpop.xlane.xlu0 %534 }
 0x64c   :  { %v539_v61 = vsub.f32 %v476_v48, %v535_v60 }
 0x64d   :  { %v538_v62 = vpop.xlane.xlu1 %537 }
 0x64e   :  { %v541_v63 = vmul.f32 1.442695, %v539_v61  ;;  %v540_v2 = vsub.f32 %v527_v51, %v538_v62 }
 0x650   :  { %3266 = vpow2.f32 %v541_v63  ;;  %v543_v3 = vmul.f32 1.442695, %v540_v2 }
 0x651   :  { %v612_v4 = vpop.permute.xlu1 %611 }
 0x652   :  { %3268 = vpow2.f32 %v543_v3  ;;  %v617_v5 = vsel %vm339_vm3, %v612_v4, 0 }
 0x653   :  { %2989 = vmatpush3.bf16.msra.mxu0 %v617_v5 }
 0x654   :  { %3000 = vmatprep.subr.bf16.mxu0 %v3447_v17 }
 0x655   :  { %v662_v21 = vpop.permute.xlu1 %661 }
 0x656   :  { %v667_v26 = vsel %vm208_vm2, %v662_v21, 0 }
 0x659   :  { %v712_v28 = vpop.permute.xlu1 %711 }
 0x65a   :  { %v3267_v6 = vpop.eup %3266  ;;  %v717_v30 = vsel %vm208_vm2, %v712_v28, 0 }
 0x65b   :  { %v545_v7 = vsel %vm208_vm2, %v3267_v6, 0.0 }
 0x65c   :  { %v3269_v8 = vpop.eup %3268  ;;  %546 = vadd.xlane.f32.xlu0 %v545_v7 }
 0x65d   :  { %v548_v9 = vsel %vm208_vm2, %v3269_v8, 0.0  ;;  %v710_v32 = vpop.permute.xlu1 %709 }
 0x660   :  { %549 = vadd.xlane.f32.xlu0 %v548_v9 }
 0x676   :  { %563 = vrot.lane.b32.xlu0 %v3631_v43, %s3453_s16 }
 0x67a   :  { %659 = vrot.lane.b32.xlu0 %v3643_v53, %s3455_s20 }
 0x6e9   :  { %v547_v10 = vpop.xlane.xlu0 %546 }
 0x6ea   :  { %3270 = vrcp.f32 %v547_v10 }
 0x6ed   :  { %v550_v11 = vpop.xlane.xlu0 %549 }
 0x6ee   :  { %3272 = vrcp.f32 %v550_v11 }
 0x6f1   :  { %v564_v12 = vpop.permute.xlu0 %563 }
 0x6f2   :  { %v569_v13 = vsel %vm339_vm3, %v564_v12, 0 }
 0x6f3   :  { %2983 = vmatpush3.bf16.msra.mxu1 %v569_v13 }
 0x6f4   :  { %v3271_v14 = vpop.eup %3270  ;;  %2994 = vmatprep.subr.bf16.mxu1 %v3447_v17 }
 0x6f5   :  { %v553_v15 = vmul.f32 %v3271_v14, %v547_v10  ;;  %v660_v31 = vpop.permute.xlu0 %659 }
 0x6f7   :  { %v555_v16 = vsub.f32 2.0, %v553_v15 }
 0x6f8   :  { %v3273_v18 = vpop.eup %3272 }
 0x6f9   :  { %v557_v19 = vmul.f32 %v3271_v14, %v555_v16  ;;  %v554_v20 = vmul.f32 %v3273_v18, %v550_v11 }
 0x6fb   :  { %v559_v22 = vmul.f32 %v3267_v6, %v557_v19  ;;  %v556_v23 = vsub.f32 2.0, %v554_v20 }
 0x6fd   :  { %v561_v24 = vpack.c.bf16 %v559_v22, %v559_v22  ;;  %v558_v25 = vmul.f32 %v3273_v18, %v556_v23 }
 0x6ff   :  { %v560_v27 = vmul.f32 %v3269_v8, %v558_v25  ;;  %2985 = vmatmul.mubr.msk.bf16.vlgmr.msra.gmra.mrb[16].mxu1 %vm208_vm2, %v561_v24 }
 0x700   :  { %2995 = vmatpush3.bf16.xpose.msra.mxu1 %v667_v26  ;;  %2996 = vmatprep.mubr.msk.bf16.mxu1 %vm3448_vm1, %v3447_v17 }
 0x701   :  { %v562_v29 = vpack.c.bf16 %v560_v27, %v560_v27  ;;  %3006 = vmatprep.subr.bf16.mxu1 %v3447_v17 }
 0x703   :  { %2991 = vmatmul.mubr.msk.bf16.vlgmr.msra.gmra.mrb[12].mxu0 %vm208_vm2, %v562_v29 }
 0x704   :  { %3001 = vmatpush3.bf16.xpose.msra.mxu0 %v717_v30  ;;  %3002 = vmatprep.mubr.msk.bf16.mxu0 %vm3448_vm1, %v3447_v17 }
 0x705   :  { %3012 = vmatprep.subr.bf16.mxu0 %v3447_v17 }
 0x707   :  { %2997 = vmatmul.mubr.msk.bf16.vlgmr.msra.gmra.mrb[20].mxu1 %vm208_vm2, %v660_v31 }
 0x708   :  { %3008 = vmatprep.mubr.msk.bf16.mxu1 %vm3448_vm1, %v3447_v17 }
 0x70b   :  { %3003 = vmatmul.mubr.msk.bf16.vlgmr.msra.gmra.mrb[16].mxu0 %vm208_vm2, %v710_v32 }
 0x70c   :  { %3014 = vmatprep.mubr.msk.bf16.mxu0 %vm3448_vm1, %v3447_v17 }
 0x7d2   :  { %v3731_v33 = vpop.f32.mrb[16].mxu1 }
 0x7d3   :  { %v2986_v34 = vpop.f32.mrb[17].mxu1 }
 0x7d4   :  { %v608_v35 = vpop.f32.mrb[18].mxu1 }
 0x7d5   :  { %v2987_v36 = vpop.f32.mrb[19].mxu1 }
 0x7d6   :  { %v3733_v37 = vpop.f32.mrb[12].mxu0 }
 0x7d7   :  { %v3224_v39 = vpack.i.bf16 %v3733_v37, %v3731_v33  ;;  %v2992_v40 = vpop.f32.mrb[13].mxu0 }
 0x7d8   :  { %v656_v42 = vpop.f32.mrb[14].mxu0 }
 0x7d9   :  { %v2993_v44 = vpop.f32.mrb[15].mxu0 }
 0x7da   :  { %v703_v45 = vpop.f32.mrb[20].mxu1 }
 0x7db   :  { %v2998_v47 = vpop.f32.mrb[21].mxu1  ;;  %v759_v48 = vsel %vm208_vm2, %v703_v45, -inf }
 0x7dc   :  { %760 = vmax.xlane.f32.xlu0 %v759_v48  ;;  %v706_v49 = vpop.f32.mrb[22].mxu1 }
 0x7dd   :  { %v2999_v50 = vpop.f32.mrb[23].mxu1 }
 0x7de   :  { %v753_v51 = vpop.f32.mrb[16].mxu0 }
 0x7df   :  { %v3004_v52 = vpop.f32.mrb[17].mxu0  ;;  %v762_v55 = vsel %vm208_vm2, %v753_v51, -inf }
 0x7e0   :  { %763 = vmax.xlane.f32.xlu1 %v762_v55  ;;  %v756_v56 = vpop.f32.mrb[18].mxu0 }
 0x7e1   :  { %v3005_v57 = vpop.f32.mrb[19].mxu0 }
 0x7f1   :  { %837 = vrot.lane.b32.xlu1 %v3633_v46, %s3456_s21 }
 0x7f5   :  { %887 = vrot.lane.b32.xlu1 %v3631_v43, %s3457_s22 }
 0x7f9   :  { %937 = vrot.lane.b32.xlu1 %v3633_v46, %s3457_s22 }
 0x7fd   :  { %935 = vrot.lane.b32.xlu1 %v3645_v54, %s4241_s23 }
 0x869   :  { %v761_v58 = vpop.xlane.xlu0 %760 }
 0x86a   :  { %v765_v59 = vsub.f32 %v703_v45, %v761_v58 }
 0x86c   :  { %v767_v60 = vmul.f32 1.442695, %v765_v59 }
 0x86d   :  { %v764_v61 = vpop.xlane.xlu1 %763 }
 0x86e   :  { %3274 = vpow2.f32 %v767_v60  ;;  %v766_v62 = vsub.f32 %v753_v51, %v764_v61 }
 0x870   :  { %v769_v63 = vmul.f32 1.442695, %v766_v62 }
 0x871   :  { %v838_v2 = vpop.permute.xlu1 %837 }
 0x872   :  { %3276 = vpow2.f32 %v769_v63  ;;  %v843_v3 = vsel %vm339_vm3, %v838_v2, 0 }
 0x873   :  { %3013 = vmatpush3.bf16.msra.mxu0 %v843_v3 }
 0x874   :  { %3024 = vmatprep.subr.bf16.mxu0 %v3447_v17 }
 0x875   :  { %v888_v18 = vpop.permute.xlu1 %887 }
 0x876   :  { %v893_v22 = vsel %vm208_vm2, %v888_v18, 0  ;;  %v1143_v18 = vld [vmem:[%s4223_s5] sm:$0xff] }
 0x878   :  { %v3275_v4 = vpop.eup %3274 }
 0x879   :  { %v771_v5 = vsel %vm208_vm2, %v3275_v4, 0.0  ;;  %v938_v24 = vpop.permute.xlu1 %937 }
 0x87a   :  { %772 = vadd.xlane.f32.xlu0 %v771_v5  ;;  %v943_v26 = vsel %vm208_vm2, %v938_v24, 0 }
 0x87c   :  { %v3277_v6 = vpop.eup %3276 }
 0x87d   :  { %v774_v54 = vsel %vm208_vm2, %v3277_v6, 0.0  ;;  %v936_v28 = vpop.permute.xlu1 %935 }
 0x87e   :  { %775 = vadd.xlane.f32.xlu0 %v774_v54 }
 0x894   :  { %789 = vrot.lane.b32.xlu0 %v3631_v43, %s3456_s21 }
 0x898   :  { %885 = vrot.lane.b32.xlu0 %v3643_v53, %s4241_s23 }
 0x907   :  { %v773_v7 = vpop.xlane.xlu0 %772 }
 0x908   :  { %3278 = vrcp.f32 %v773_v7 }
 0x90b   :  { %v776_v8 = vpop.xlane.xlu0 %775 }
 0x90c   :  { %3280 = vrcp.f32 %v776_v8 }
 0x90f   :  { %v790_v9 = vpop.permute.xlu0 %789 }
 0x910   :  { %v795_v10 = vsel %vm339_vm3, %v790_v9, 0 }
 0x911   :  { %3007 = vmatpush3.bf16.msra.mxu1 %v795_v10 }
 0x912   :  { %v3279_v11 = vpop.eup %3278  ;;  %3018 = vmatprep.subr.bf16.mxu1 %v3447_v17 }
 0x913   :  { %v779_v12 = vmul.f32 %v3279_v11, %v773_v7  ;;  %v886_v27 = vpop.permute.xlu0 %885 }
 0x915   :  { %v781_v13 = vsub.f32 2.0, %v779_v12 }
 0x916   :  { %v3281_v14 = vpop.eup %3280 }
 0x917   :  { %v783_v15 = vmul.f32 %v3279_v11, %v781_v13  ;;  %v780_v16 = vmul.f32 %v3281_v14, %v776_v8 }
 0x919   :  { %v785_v19 = vmul.f32 %v3275_v4, %v783_v15  ;;  %v782_v20 = vsub.f32 2.0, %v780_v16 }
 0x91b   :  { %v787_v53 = vpack.c.bf16 %v785_v19, %v785_v19  ;;  %v784_v21 = vmul.f32 %v3281_v14, %v782_v20  ;;  %v1144_v19 = vld [vmem:[%s4223_s5 + $0x8] sm:$0xff] }
 0x91c   :  { %v1148_v20 = vpack.c.bf16 %v1144_v19, %v1143_v18 }
 0x91d   :  { %v786_v23 = vmul.f32 %v3277_v6, %v784_v21  ;;  %3009 = vmatmul.mubr.msk.bf16.vlgmr.msra.gmra.mrb[24].mxu1 %vm208_vm2, %v787_v53  ;;  %v1145_v53 = vld [vmem:[%s4223_s5 + $0x10] sm:$0xff]  ;;  %v1146_v21 = vld [vmem:[%s4223_s5 + $0x18] sm:$0xff] }
 0x91e   :  { %3019 = vmatpush3.bf16.xpose.msra.mxu1 %v893_v22  ;;  %3020 = vmatprep.mubr.msk.bf16.mxu1 %vm3448_vm1, %v3447_v17  ;;  %v1149_v22 = vpack.c.bf16 %v1146_v21, %v1145_v53  ;;  %v2784_v53 = vld [vmem:[%s4225_s7] ss:$0 sm:$0xff] }
 0x91f   :  { %v788_v25 = vpack.c.bf16 %v786_v23, %v786_v23  ;;  %3030 = vmatprep.subr.bf16.mxu1 %v3447_v17 }
 0x921   :  { %3015 = vmatmul.mubr.msk.bf16.vlgmr.msra.gmra.mrb[20].mxu0 %vm208_vm2, %v788_v25 }
 0x922   :  { %3025 = vmatpush3.bf16.xpose.msra.mxu0 %v943_v26  ;;  %3026 = vmatprep.mubr.msk.bf16.mxu0 %vm3448_vm1, %v3447_v17 }
 0x923   :  { %3036 = vmatprep.subr.bf16.mxu0 %v3447_v17 }
 0x925   :  { %3021 = vmatmul.mubr.msk.bf16.vlgmr.msra.gmra.mrb[28].mxu1 %vm208_vm2, %v886_v27 }
 0x926   :  { %3032 = vmatprep.mubr.msk.bf16.mxu1 %vm3448_vm1, %v3447_v17 }
 0x929   :  { %3027 = vmatmul.mubr.msk.bf16.vlgmr.msra.gmra.mrb[24].mxu0 %vm208_vm2, %v936_v28 }
 0x92a   :  { %3038 = vmatprep.mubr.msk.bf16.mxu0 %vm3448_vm1, %v3447_v17 }
 0x9f0   :  { %v831_v29 = vpop.f32.mrb[24].mxu1 }
 0x9f1   :  { %v3010_v30 = vpop.f32.mrb[25].mxu1 }
 0x9f2   :  { %v834_v31 = vpop.f32.mrb[26].mxu1 }
 0x9f3   :  { %v3011_v32 = vpop.f32.mrb[27].mxu1 }
 0x9f4   :  { %v879_v34 = vpop.f32.mrb[20].mxu0 }
 0x9f5   :  { %v3229_v35 = vpack.i.bf16 %v879_v34, %v831_v29  ;;  %v3016_v36 = vpop.f32.mrb[21].mxu0 }
 0x9f6   :  { %v882_v40 = vpop.f32.mrb[22].mxu0 }
 0x9f7   :  { %v3017_v42 = vpop.f32.mrb[23].mxu0 }
 0x9f8   :  { %v929_v44 = vpop.f32.mrb[28].mxu1 }
 0x9f9   :  { %v3022_v45 = vpop.f32.mrb[29].mxu1  ;;  %v985_v47 = vsel %vm208_vm2, %v929_v44, -inf }
 0x9fa   :  { %986 = vmax.xlane.f32.xlu0 %v985_v47  ;;  %v932_v48 = vpop.f32.mrb[30].mxu1 }
 0x9fb   :  { %v3023_v49 = vpop.f32.mrb[31].mxu1 }
 0x9fc   :  { %v979_v50 = vpop.f32.mrb[24].mxu0 }
 0x9fd   :  { %v3028_v51 = vpop.f32.mrb[25].mxu0  ;;  %v988_v52 = vsel %vm208_vm2, %v979_v50, -inf }
 0x9fe   :  { %989 = vmax.xlane.f32.xlu1 %v988_v52  ;;  %v982_v55 = vpop.f32.mrb[26].mxu0 }
 0x9ff   :  { %v3029_v56 = vpop.f32.mrb[27].mxu0 }
 0xa0f   :  { %1063 = vrot.lane.b32.xlu1 %v3633_v46, %s4239_s24 }
 0xa13   :  { %3225 = vrot.lane.b32.xlu1 %v3224_v39, %s4237_s19 }
 0xa17   :  { %3230 = vrot.lane.b32.xlu1 %v3229_v35, %s4244_s0 }
 0xa87   :  { %v987_v57 = vpop.xlane.xlu0 %986 }
 0xa88   :  { %v991_v58 = vsub.f32 %v929_v44, %v987_v57 }
 0xa8a   :  { %v993_v59 = vmul.f32 1.442695, %v991_v58 }
 0xa8b   :  { %v990_v60 = vpop.xlane.xlu1 %989 }
 0xa8c   :  { %3282 = vpow2.f32 %v993_v59  ;;  %v992_v61 = vsub.f32 %v979_v50, %v990_v60 }
 0xa8e   :  { %v995_v62 = vmul.f32 1.442695, %v992_v61 }
 0xa8f   :  { %v1064_v63 = vpop.permute.xlu1 %1063 }
 0xa90   :  { %3284 = vpow2.f32 %v995_v62  ;;  %v1069_v2 = vsel %vm339_vm3, %v1064_v63, 0 }
 0xa91   :  { %3037 = vmatpush3.bf16.msra.mxu0 %v1069_v2 }
 0xa92   :  { %3050 = vmatprep.subr.bf16.mxu0 %v3447_v17 }
 0xa93   :  { %v3226_v32 = vpop.permute.xlu1 %3225 }
 0xa94   :  { %v3228_v35 = vunpack.i.h.bf16 %v3226_v32  ;;  %v3227_v36 = vunpack.i.l.bf16 %v3226_v32  ;;  %v1327_v32 = vld [vmem:[%s4229_s11 + $0x10] sm:$0xff] }
 0xa96   :  { %v3283_v46 = vpop.eup %3282  ;;  %v1136_v45 = vsel %vm208_vm2, %v3693_v41, %v3228_v35  ;;  %v1135_v47 = vsel %vm208_vm2, %v3691_v38, %v3227_v36  ;;  %v2783_v38 = vld [vmem:[%s4224_s6] ss:$0 sm:$0xff] }
 0xa97   :  { %v997_v33 = vsel %vm208_vm2, %v3283_v46, 0.0  ;;  %v3231_v34 = vpop.permute.xlu1 %3230  ;;  %v1329_v36 = vld [vmem:[%s4229_s11 + $0x20] sm:$0xff] }
 0xa98   :  { %998 = vadd.xlane.f32.xlu0 %v997_v33  ;;  %v3233_v40 = vunpack.i.h.bf16 %v3231_v34  ;;  %v3232_v42 = vunpack.i.l.bf16 %v3231_v34  ;;  %v1328_v34 = vld [vmem:[%s4229_s11 + $0x18] sm:$0xff] }
 0xa99   :  { %v1335_v35 = vpack.c.bf16 %v1328_v34, %v1327_v32 }
 0xa9a   :  { %v3285_v37 = vpop.eup %3284  ;;  %v1139_v50 = vsel %vm1137_vm4, %v1136_v45, %v3233_v40  ;;  %v1138_v51 = vsel %vm1137_vm4, %v1135_v47, %v3232_v42  ;;  %v1330_v40 = vld [vmem:[%s4229_s11 + $0x28] sm:$0xff]  ;;  %v1332_v45 = vld [vmem:[%s4229_s11 + $0x38] sm:$0xff] }
 0xa9b   :  { %v1000_v39 = vsel %vm208_vm2, %v3285_v37, 0.0  ;;  %v1336_v42 = vpack.c.bf16 %v1330_v40, %v1329_v36 }
 0xa9c   :  { %1001 = vadd.xlane.f32.xlu0 %v1000_v39 }
 0xab2   :  { %1015 = vrot.lane.b32.xlu0 %v3631_v43, %s4239_s24 }
 0xb25   :  { %v999_v3 = vpop.xlane.xlu0 %998 }
 0xb26   :  { %3286 = vrcp.f32 %v999_v3 }
 0xb29   :  { %v1002_v4 = vpop.xlane.xlu0 %1001 }
 0xb2a   :  { %3288 = vrcp.f32 %v1002_v4 }
 0xb2d   :  { %v1016_v5 = vpop.permute.xlu0 %1015 }
 0xb2e   :  { %v1021_v6 = vsel %vm339_vm3, %v1016_v5, 0 }
 0xb2f   :  { %3031 = vmatpush3.bf16.msra.mxu1 %v1021_v6 }
 0xb30   :  { %v3287_v54 = vpop.eup %3286  ;;  %3042 = vmatprep.subr.bf16.mxu1 %v3447_v17 }
 0xb31   :  { %v1005_v7 = vmul.f32 %v3287_v54, %v999_v3 }
 0xb33   :  { %v1007_v8 = vsub.f32 2.0, %v1005_v7  ;;  %v1249_v7 = vld [vmem:[%s4227_s9] sm:$0xff] }
 0xb34   :  { %v3289_v9 = vpop.eup %3288 }
 0xb35   :  { %v1009_v10 = vmul.f32 %v3287_v54, %v1007_v8  ;;  %v1006_v11 = vmul.f32 %v3289_v9, %v1002_v4  ;;  %v1250_v8 = vld [vmem:[%s4227_s9 + $0x8] sm:$0xff] }
 0xb37   :  { %v1011_v12 = vmul.f32 %v3283_v46, %v1009_v10  ;;  %v1008_v13 = vsub.f32 2.0, %v1006_v11  ;;  %v1251_v10 = vld [vmem:[%s4227_s9 + $0x10] sm:$0xff]  ;;  %v1252_v11 = vld [vmem:[%s4227_s9 + $0x18] sm:$0xff] }
 0xb39   :  { %v1013_v14 = vpack.c.bf16 %v1011_v12, %v1011_v12  ;;  %v1010_v43 = vmul.f32 %v3289_v9, %v1008_v13  ;;  %v1254_v9 = vpack.c.bf16 %v1250_v8, %v1249_v7  ;;  %v1255_v12 = vpack.c.bf16 %v1252_v11, %v1251_v10  ;;  %v2789_v8 = vld [vmem:[#allocation7] ss:$0 sm:$0xff] }
 0xb3b   :  { %v1012_v15 = vmul.f32 %v3285_v37, %v1010_v43  ;;  %3033 = vmatmul.mubr.msk.bf16.vlgmr.msra.gmra.mrb[32].mxu1 %vm208_vm2, %v1013_v14 }
 0xb3c   :  { %3046 = vmatprep.mubr.msk.bf16.mxu1 %vm3448_vm1, %v3447_v17  ;;  %3043 = vmatpush3.bf16.msra.mxu1 %v1148_v20 }
 0xb3d   :  { %v1014_v16 = vpack.c.bf16 %v1012_v15, %v1012_v15  ;;  %3044 = vmatprep.subr.bf16.mxu1 %v3447_v17 }
 0xb3f   :  { %3039 = vmatmul.mubr.msk.bf16.vlgmr.msra.gmra.mrb[28].mxu0 %vm208_vm2, %v1014_v16 }
 0xb40   :  { %3054 = vmatprep.mubr.msk.bf16.mxu0 %vm3448_vm1, %v3447_v17  ;;  %3045 = vmatpush3.bf16.msra.mxu1 %v1149_v22 }
 0xb41   :  { %3058 = vmatprep.subr.bf16.mxu1 %v3447_v17  ;;  %3051 = vmatpush3.bf16.msra.mxu0 %v1254_v9 }
 0xb42   :  { %3052 = vmatprep.subr.bf16.mxu0 %v3447_v17 }
 0xb45   :  { %3053 = vmatpush3.bf16.msra.mxu0 %v1255_v12 }
 0xb46   :  { %3070 = vmatprep.subr.bf16.mxu0 %v3447_v17 }
 0xc0e   :  { %v1057_v23 = vpop.f32.mrb[32].mxu1 }
 0xc0f   :  { %v3034_v24 = vpop.f32.mrb[33].mxu1 }
 0xc10   :  { %v1060_v25 = vpop.f32.mrb[34].mxu1  ;;  %v2785_v24 = vld [vmem:[%s4226_s8] ss:$0 sm:$0xff] }
 0xc11   :  { %v3035_v26 = vpop.f32.mrb[35].mxu1 }
 0xc12   :  { %v1105_v27 = vpop.f32.mrb[28].mxu0 }
 0xc13   :  { %v3234_v28 = vpack.i.bf16 %v1105_v27, %v1057_v23  ;;  %v3040_v29 = vpop.f32.mrb[29].mxu0 }
 0xc14   :  { %v1108_v30 = vpop.f32.mrb[30].mxu0  ;;  %v1325_v29 = vld [vmem:[%s4229_s11] sm:$0xff] }
 0xc15   :  { %v3041_v31 = vpop.f32.mrb[31].mxu0  ;;  %3235 = vrot.lane.b32.xlu0 %v3234_v28, %s4243_s25  ;;  %v1326_v30 = vld [vmem:[%s4229_s11 + $0x8] sm:$0xff] }
 0xc16   :  { %v1334_v31 = vpack.c.bf16 %v1326_v30, %v1325_v29  ;;  %v2797_v29 = vld [vmem:[%s4221_s3 + $0x38] sm:$0xff] }
 0xc87   :  { %v3236_v44 = vpop.permute.xlu0 %3235 }
 0xc88   :  { %v3238_v48 = vunpack.i.h.bf16 %v3236_v44  ;;  %v3237_v49 = vunpack.i.l.bf16 %v3236_v44  ;;  %v1331_v44 = vld [vmem:[%s4229_s11 + $0x30] sm:$0xff] }
 0xc89   :  { %v1337_v47 = vpack.c.bf16 %v1332_v45, %v1331_v44  ;;  %v2792_v44 = vld [vmem:[%s4219_s1 + $0x1] ss:$0 sm:$0xff]  ;;  %s4245_s1 = smov 104  }
 0xc8a   :  { %v1142_v52 = vsel %vm1140_vm5, %v1139_v50, %v3238_v48  ;;  %v1141_v55 = vsel %vm1140_vm5, %v1138_v51, %v3237_v49  ;;  %v2786_v48 = vld [vmem:[#allocation5] ss:$0 sm:$0xff] }
 0xc8b   :  { %v1147_v56 = vpack.c.bf16 %v1142_v52, %v1141_v55 }
 0xc8d   :  { %3047 = vmatmul.mubr.msk.bf16.vlgmr.msra.gmra.mrb[36].mxu1 %vm97_vm0, %v1147_v56 }
 0xc8e   :  { %3066 = vmatprep.mubr.msk.bf16.mxu1 %vm3448_vm1, %v3447_v17  ;;  %3059 = vmatpush3.bf16.msra.mxu1 %v1334_v31 }
 0xc8f   :  { %3060 = vmatprep.subr.bf16.mxu1 %v3447_v17 }
 0xc92   :  { %3061 = vmatpush3.bf16.msra.mxu1 %v1335_v35 }
 0xc93   :  { %3062 = vmatprep.subr.bf16.mxu1 %v3447_v17 }
 0xc96   :  { %3063 = vmatpush3.bf16.msra.mxu1 %v1336_v42 }
 0xc97   :  { %3064 = vmatprep.subr.bf16.mxu1 %v3447_v17 }
 0xc9a   :  { %3065 = vmatpush3.bf16.msra.mxu1 %v1337_v47 }
 0xc9b   :  { %3084 = vmatprep.subr.bf16.mxu1 %v3447_v17 }
 0xd60   :  { %v1187_v41 = vpop.f32.mrb[36].mxu1 }
 0xd61   :  { %v1194_v57 = vadd.f32 %v1187_v41, %v3587_v0  ;;  %v3048_v58 = vpop.f32.mrb[37].mxu1 }
 0xd62   :  { %v1190_v59 = vpop.f32.mrb[38].mxu1 }
 0xd63   :  { %v3826_v60 = vadd.f32 %v2783_v38, %v1194_v57  ;;  %v1195_v61 = vadd.f32 %v1190_v59, %v3589_v1  ;;  %v3049_v62 = vpop.f32.mrb[39].mxu1 }
 0xd65   :  { %v3829_v63 = vadd.f32 %v2783_v38, %v1195_v61  ;;  %v1207_v2 = vsel %vm97_vm0, %v3826_v60, 0.0 }
 0xd66   :  { %1208 = vadd.xlane.f32.xlu1 %v1207_v2 }
 0xd67   :  { %v1210_v46 = vsel %vm97_vm0, %v3829_v63, 0.0 }
 0xd68   :  { %1211 = vadd.xlane.f32.xlu0 %v1210_v46 }
 0xdf3   :  { %v1209_v33 = vpop.xlane.xlu1 %1208 }
 0xdf4   :  { %v1213_v37 = vmul.f32 0.03125, %v1209_v33 }
 0xdf5   :  { %v1212_v0 = vpop.xlane.xlu0 %1211 }
 0xdf6   :  { %v1215_v39 = vsub.f32 %v3826_v60, %v1213_v37  ;;  %v1214_v3 = vmul.f32 0.03125, %v1212_v0 }
 0xdf8   :  { %v1216_v4 = vsub.f32 %v3829_v63, %v1214_v3  ;;  %v1217_v1 = vmul.f32 %v1215_v39, %v1215_v39 }
 0xdfa   :  { %v1219_v5 = vsel %vm97_vm0, %v1217_v1, 0.0  ;;  %v1218_v6 = vmul.f32 %v1216_v4, %v1216_v4 }
 0xdfb   :  { %1220 = vadd.xlane.f32.xlu0 %v1219_v5 }
 0xdfc   :  { %v1222_v54 = vsel %vm97_vm0, %v1218_v6, 0.0 }
 0xdff   :  { %1223 = vadd.xlane.f32.xlu0 %v1222_v54 }
 0xe88   :  { %v1221_v13 = vpop.xlane.xlu0 %1220 }
 0xe89   :  { %v1225_v14 = vmul.f32 0.03125, %v1221_v13 }
 0xe8b   :  { %v1227_v43 = vadd.f32 1e-06, %v1225_v14 }
 0xe8c   :  { %v1224_v15 = vpop.xlane.xlu0 %1223 }
 0xe8d   :  { %3290 = vrsqrt.f32 %v1227_v43  ;;  %v1226_v16 = vmul.f32 0.03125, %v1224_v15 }
 0xe8f   :  { %v1228_v18 = vadd.f32 1e-06, %v1226_v16 }
 0xe91   :  { %3292 = vrsqrt.f32 %v1228_v18 }
 0xe97   :  { %v3291_v19 = vpop.eup %3290 }
 0xe98   :  { %v1231_v20 = vmul.f32 %v3291_v19, %v1215_v39 }
 0xe9a   :  { %v1239_v22 = vmul.f32 %v2784_v53, %v1231_v20 }
 0xe9b   :  { %v3293_v21 = vpop.eup %3292 }
 0xe9c   :  { %v1232_v23 = vmul.f32 %v3293_v21, %v1216_v4  ;;  %v1247_v26 = vadd.f32 %v2785_v24, %v1239_v22 }
 0xe9e   :  { %v1240_v25 = vmul.f32 %v2784_v53, %v1232_v23 }
 0xea0   :  { %v1248_v27 = vadd.f32 %v2785_v24, %v1240_v25  ;;  %v2794_v25 = vld [vmem:[%s4221_s3 + $0x20] sm:$0xff] }
 0xea2   :  { %v1253_v28 = vpack.c.bf16 %v1248_v27, %v1247_v26  ;;  %v2795_v26 = vld [vmem:[%s4221_s3 + $0x28] sm:$0xff] }
 0xea3   :  { %v1446_v27 = vpack.c.bf16 %v2795_v26, %v2794_v25 }
 0xea4   :  { %3055 = vmatmul.mubr.msk.bf16.vlgmr.msra.gmra.mrb[32].mxu0 %vm97_vm0, %v1253_v28  ;;  %v2796_v28 = vld [vmem:[%s4221_s3 + $0x30] sm:$0xff]  ;;  %s2749_s3 = sshll.u32 %s3461_s18, 4  ;;  %s2750_s3 = int_to_ptr.vmem [resolvable:$true] %s2749_s3 }
 0xea5   :  { %3074 = vmatprep.mubr.msk.bf16.mxu0 %vm3448_vm1, %v3447_v17  ;;  %3071 = vmatpush3.bf16.msra.mxu0 %v1446_v27  ;;  %v1447_v30 = vpack.c.bf16 %v2797_v29, %v2796_v28  ;;  %s3412_s10 = scalar_lea.vmem %s2750_s3, 256  ;;  %p3417_p11 = scmp.lt.s32.totalorder %s2750_s3, %s2750_s3 }
 0xea6   :  { %3072 = vmatprep.subr.bf16.mxu0 %v3447_v17  ;;  %p3413_p10 = scmp.ne.s32.totalorder %s2750_s3, %s3412_s10  ;;  %p3418_p12 = scmp.lt.s32.totalorder %s3412_s10, %s3412_s10 }
 0xea8   :  { %p3419_p13 = por %p3418_p12, %p3417_p11 }
 0xea9   :  { %3073 = vmatpush3.bf16.msra.mxu0 %v1447_v30 }
 0xeaa   :  { %3078 = vmatprep.subr.bf16.mxu0 %v3447_v17  ;;  %p3420_p0 = pnand %p3419_p13, %p3413_p10 }
 0xf77   :  { %v1300_v49 = vpop.f32.mrb[32].mxu0 }
 0xf78   :  { %v1301_v50 = vadd.f32 %v2786_v48, %v1300_v49  ;;  %v3056_v51 = vpop.f32.mrb[33].mxu0 }
 0xf79   :  { %v1303_v52 = vpop.f32.mrb[34].mxu0 }
 0xf7a   :  { %v1307_v55 = vmul.f32 %v1301_v50, %v1301_v50  ;;  %v1304_v56 = vadd.f32 %v2786_v48, %v1303_v52  ;;  %v3057_v41 = vpop.f32.mrb[35].mxu0 }
 0xf7b   :  { %v2799_v41 = vld [vmem:[%s4222_s4 + $0x1] ss:$0 sm:$0xff]  ;;  %s4247_s4 = smov 8  }
 0xf7c   :  { %v1309_v38 = vmul.f32 %v1307_v55, %v1301_v50  ;;  %v1308_v57 = vmul.f32 %v1304_v56, %v1304_v56 }
 0xf7e   :  { %v1311_v58 = vmul.f32 0.044715, %v1309_v38  ;;  %v1310_v59 = vmul.f32 %v1308_v57, %v1304_v56 }
 0xf80   :  { %v1313_v61 = vadd.f32 %v1311_v58, %v1301_v50  ;;  %v1312_v62 = vmul.f32 0.044715, %v1310_v59 }
 0xf82   :  { %v1315_v2 = vmul.f32 0.7978846, %v1313_v61  ;;  %v1314_v46 = vadd.f32 %v1312_v62, %v1304_v56 }
 0xf84   :  { %3294 = vtanh.f32 %v1315_v2  ;;  %v1316_v33 = vmul.f32 0.7978846, %v1314_v46 }
 0xf86   :  { %3296 = vtanh.f32 %v1316_v33 }
 0xf8e   :  { %v3295_v37 = vpop.eup %3294 }
 0xf8f   :  { %v1319_v0 = vadd.f32 1.0, %v3295_v37 }
 0xf90   :  { %v3297_v39 = vpop.eup %3296 }
 0xf91   :  { %v1321_v3 = vmul.f32 0.5, %v1319_v0  ;;  %v1320_v4 = vadd.f32 1.0, %v3297_v39 }
 0xf93   :  { %v1322_v1 = vmul.f32 0.5, %v1320_v4  ;;  %v1323_v5 = vmul.f32 %v1321_v3, %v1301_v50  ;;  %v2793_v50 = vld [vmem:[%s4220_s2 + $0x1] ss:$0 sm:$0xff]  ;;  %s4246_s2 = smov 40  }
 0xf95   :  { %v1324_v6 = vmul.f32 %v1322_v1, %v1304_v56 }
 0xf97   :  { %v1333_v54 = vpack.c.bf16 %v1324_v6, %v1323_v5 }
 0xf99   :  { %3067 = vmatmul.mubr.msk.bf16.vlgmr.msra.gmra.mrb[40].mxu1 %vm1338_vm6, %v1333_v54 }
 0xf9a   :  { %3086 = vmatprep.mubr.msk.bf16.mxu1 %vm3448_vm1, %v3447_v17 }
0x106c   :  { %v1376_v7 = vpop.f32.mrb[40].mxu1 }
0x106d   :  { %v1383_v9 = vadd.f32 %v1376_v7, %v3826_v60  ;;  %v3068_v10 = vpop.f32.mrb[41].mxu1 }
0x106e   :  { %v1379_v11 = vpop.f32.mrb[42].mxu1 }
0x106f   :  { %v3894_v12 = vadd.f32 %v2789_v8, %v1383_v9  ;;  %v1384_v13 = vadd.f32 %v1379_v11, %v3829_v63  ;;  %v3069_v14 = vpop.f32.mrb[43].mxu1 }
0x1071   :  { %v3897_v43 = vadd.f32 %v2789_v8, %v1384_v13  ;;  %v1398_v15 = vsel %vm97_vm0, %v3894_v12, 0.0 }
0x1072   :  { %1399 = vadd.xlane.f32.xlu1 %v1398_v15 }
0x1073   :  { %v1401_v16 = vsel %vm97_vm0, %v3897_v43, 0.0 }
0x1074   :  { %1402 = vadd.xlane.f32.xlu0 %v1401_v16 }
0x10ff   :  { %v1400_v18 = vpop.xlane.xlu1 %1399 }
0x1100   :  { %v1404_v19 = vmul.f32 0.03125, %v1400_v18 }
0x1101   :  { %v1403_v60 = vpop.xlane.xlu0 %1402 }
0x1102   :  { %v1406_v20 = vsub.f32 %v3894_v12, %v1404_v19  ;;  %v1405_v53 = vmul.f32 0.03125, %v1403_v60 }
0x1104   :  { %v1407_v21 = vsub.f32 %v3897_v43, %v1405_v53  ;;  %v1408_v63 = vmul.f32 %v1406_v20, %v1406_v20 }
0x1106   :  { %v1410_v22 = vsel %vm97_vm0, %v1408_v63, 0.0  ;;  %v1409_v23 = vmul.f32 %v1407_v21, %v1407_v21 }
0x1107   :  { %1411 = vadd.xlane.f32.xlu1 %v1410_v22 }
0x1108   :  { %v1413_v24 = vsel %vm97_vm0, %v1409_v23, 0.0 }
0x1109   :  { %1414 = vadd.xlane.f32.xlu0 %v1413_v24 }
0x1194   :  { %v1412_v31 = vpop.xlane.xlu1 %1411 }
0x1195   :  { %v1416_v32 = vmul.f32 0.03125, %v1412_v31 }
0x1196   :  { %v1415_v34 = vpop.xlane.xlu0 %1414 }
0x1197   :  { %v1418_v35 = vadd.f32 1e-06, %v1416_v32  ;;  %v1417_v36 = vmul.f32 0.03125, %v1415_v34 }
0x1199   :  { %3298 = vrsqrt.f32 %v1418_v35  ;;  %v1419_v40 = vadd.f32 1e-06, %v1417_v36 }
0x119b   :  { %3300 = vrsqrt.f32 %v1419_v40 }
0x11a3   :  { %v3299_v42 = vpop.eup %3298 }
0x11a4   :  { %v1422_v45 = vmul.f32 %v3299_v42, %v1406_v20 }
0x11a5   :  { %v3301_v47 = vpop.eup %3300 }
0x11a6   :  { %v1430_v48 = vmul.f32 %v2792_v44, %v1422_v45  ;;  %v1423_v49 = vmul.f32 %v3301_v47, %v1407_v21 }
0x11a8   :  { %v1431_v51 = vmul.f32 %v2792_v44, %v1423_v49  ;;  %v1438_v52 = vadd.f32 %v2793_v50, %v1430_v48 }
0x11aa   :  { %v1439_v55 = vadd.f32 %v2793_v50, %v1431_v51 }
0x11ac   :  { %v1445_v56 = vpack.c.bf16 %v1439_v55, %v1438_v52 }
0x11ae   :  { %3075 = vmatmul.mubr.msk.bf16.vlgmr.msra.gmra.mrb[36].mxu0 %vm97_vm0, %v1445_v56 }
0x11af   :  { %3080 = vmatprep.mubr.msk.bf16.mxu0 %vm3448_vm1, %v3447_v17 }
0x1281   :  { %v1493_v38 = vpop.f32.mrb[36].mxu0 }
0x1282   :  { %v1494_v57 = vadd.f32 %v2799_v41, %v1493_v38  ;;  %v3076_v58 = vpop.f32.mrb[37].mxu0 }
0x1283   :  { %v1496_v59 = vpop.f32.mrb[38].mxu0 }
0x1284   :  { %v3933_v61 = vpack.c.bf16 %v1494_v57, %v1494_v57  ;;  %v1497_v62 = vadd.f32 %v2799_v41, %v1496_v59  ;;  %v3077_v2 = vpop.f32.mrb[39].mxu0  ;;  %v1500_v39 = vmul.f32 0.35355338, %v1494_v57 }
0x1286   :  { %v3935_v46 = vpack.c.bf16 %v1497_v62, %v1497_v62  ;;  %1507 = vrot.lane.b32.xlu1 %v3933_v61, %s3449_s30  ;;  %v1501_v4 = vmul.f32 0.35355338, %v1497_v62  ;;  %v3945_v1 = vpack.c.bf16 %v1500_v39, %v1500_v39 }
0x1288   :  { %1556 = vrot.lane.b32.xlu0 %v3935_v46, %s3449_s30  ;;  %v3947_v5 = vpack.c.bf16 %v1501_v4, %v1501_v4 }
0x12f8   :  { %v1508_v33 = vpop.permute.xlu1 %1507 }
0x12f9   :  { %v1513_v37 = vsel %vm208_vm2, %v1508_v33, 0 }
0x12fa   :  { %3079 = vmatpush3.bf16.xpose.msra.mxu0 %v1513_v37  ;;  %v1557_v0 = vpop.permute.xlu0 %1556 }
0x12fb   :  { %v1562_v3 = vsel %vm208_vm2, %v1557_v0, 0  ;;  %3090 = vmatprep.subr.bf16.mxu0 %v3447_v17 }
0x12fc   :  { %3085 = vmatpush3.bf16.xpose.msra.mxu1 %v1562_v3 }
0x12fd   :  { %3096 = vmatprep.subr.bf16.mxu1 %v3447_v17 }
0x1301   :  { %3081 = vmatmul.mubr.msk.bf16.vlgmr.msra.gmra.mrb[40].mxu0 %vm208_vm2, %v3945_v1 }
0x1302   :  { %3092 = vmatprep.mubr.msk.bf16.mxu0 %vm3448_vm1, %v3447_v17 }
0x1303   :  { %3087 = vmatmul.mubr.msk.bf16.vlgmr.msra.gmra.mrb[44].mxu1 %vm208_vm2, %v3947_v5 }
0x1304   :  { %3098 = vmatprep.mubr.msk.bf16.mxu1 %vm3448_vm1, %v3447_v17 }
0x13d4   :  { %v1549_v6 = vpop.f32.mrb[40].mxu0 }
0x13d5   :  { %v3082_v54 = vpop.f32.mrb[41].mxu0  ;;  %v1604_v7 = vsel %vm208_vm2, %v1549_v6, -inf }
0x13d6   :  { %1605 = vmax.xlane.f32.xlu1 %v1604_v7  ;;  %v1552_v8 = vpop.f32.mrb[42].mxu0  ;;  %v1598_v9 = vpop.f32.mrb[44].mxu1 }
0x13d7   :  { %v3083_v10 = vpop.f32.mrb[43].mxu0  ;;  %v3088_v11 = vpop.f32.mrb[45].mxu1  ;;  %v1607_v13 = vsel %vm208_vm2, %v1598_v9, -inf }
0x13d8   :  { %1608 = vmax.xlane.f32.xlu0 %v1607_v13  ;;  %v1601_v14 = vpop.f32.mrb[46].mxu1 }
0x13d9   :  { %v3089_v15 = vpop.f32.mrb[47].mxu1 }
0x13e7   :  { %1634 = vrot.lane.b32.xlu1 %v3933_v61, %s3450_s12 }
0x1463   :  { %v1606_v16 = vpop.xlane.xlu1 %1605 }
0x1464   :  { %v1610_v18 = vsub.f32 %v1549_v6, %v1606_v16 }
0x1465   :  { %v1609_v19 = vpop.xlane.xlu0 %1608 }
0x1466   :  { %v1612_v60 = vmul.f32 1.442695, %v1610_v18  ;;  %v1611_v20 = vsub.f32 %v1598_v9, %v1609_v19 }
0x1467   :  { %v1635_v53 = vpop.permute.xlu1 %1634 }
0x1468   :  { %3302 = vpow2.f32 %v1612_v60  ;;  %v1614_v21 = vmul.f32 1.442695, %v1611_v20  ;;  %v1640_v63 = vsel %vm339_vm3, %v1635_v53, 0 }
0x1469   :  { %3091 = vmatpush3.bf16.msra.mxu0 %v1640_v63 }
0x146a   :  { %3304 = vpow2.f32 %v1614_v21  ;;  %3102 = vmatprep.subr.bf16.mxu0 %v3447_v17 }
0x1472   :  { %v3303_v22 = vpop.eup %3302 }
0x1473   :  { %v1616_v23 = vsel %vm208_vm2, %v3303_v22, 0.0 }
0x1474   :  { %v3305_v24 = vpop.eup %3304  ;;  %1617 = vadd.xlane.f32.xlu1 %v1616_v23 }
0x1475   :  { %v1619_v25 = vsel %vm208_vm2, %v3305_v24, 0.0 }
0x1476   :  { %1620 = vadd.xlane.f32.xlu0 %v1619_v25 }
0x1485   :  { %1733 = vrot.lane.b32.xlu1 %v3933_v61, %s3451_s28 }
0x1489   :  { %1784 = vrot.lane.b32.xlu1 %v3935_v46, %s3451_s28 }
0x148c   :  { %1682 = vrot.lane.b32.xlu0 %v3935_v46, %s3450_s12 }
0x148d   :  { %1731 = vrot.lane.b32.xlu1 %v3945_v1, %s3452_s29 }
0x1490   :  { %1782 = vrot.lane.b32.xlu0 %v3947_v5, %s3452_s29 }
0x1501   :  { %v1618_v26 = vpop.xlane.xlu1 %1617 }
0x1502   :  { %3306 = vrcp.f32 %v1618_v26 }
0x1503   :  { %v1621_v27 = vpop.xlane.xlu0 %1620 }
0x1504   :  { %3308 = vrcp.f32 %v1621_v27 }
0x1505   :  { %v1734_v36 = vpop.permute.xlu1 %1733 }
0x1506   :  { %v1739_v51 = vsel %vm208_vm2, %v1734_v36, 0 }
0x1507   :  { %v1683_v28 = vpop.permute.xlu0 %1682 }
0x1508   :  { %v1688_v29 = vsel %vm339_vm3, %v1683_v28, 0 }
0x1509   :  { %3097 = vmatpush3.bf16.msra.mxu1 %v1688_v29  ;;  %v1785_v49 = vpop.permute.xlu1 %1784 }
0x150a   :  { %3108 = vmatprep.subr.bf16.mxu1 %v3447_v17  ;;  %v1790_v52 = vsel %vm208_vm2, %v1785_v49, 0 }
0x150b   :  { %v1783_v56 = vpop.permute.xlu0 %1782 }
0x150c   :  { %v3307_v30 = vpop.eup %3306 }
0x150d   :  { %v1624_v31 = vmul.f32 %v3307_v30, %v1618_v26  ;;  %v1732_v55 = vpop.permute.xlu1 %1731 }
0x150e   :  { %v3309_v32 = vpop.eup %3308 }
0x150f   :  { %v1626_v34 = vsub.f32 2.0, %v1624_v31  ;;  %v1625_v35 = vmul.f32 %v3309_v32, %v1621_v27 }
0x1511   :  { %v1628_v40 = vmul.f32 %v3307_v30, %v1626_v34  ;;  %v1627_v42 = vsub.f32 2.0, %v1625_v35 }
0x1513   :  { %v1630_v44 = vmul.f32 %v3303_v22, %v1628_v40  ;;  %v1629_v45 = vmul.f32 %v3309_v32, %v1627_v42 }
0x1515   :  { %v1632_v47 = vpack.c.bf16 %v1630_v44, %v1630_v44  ;;  %v1631_v48 = vmul.f32 %v3305_v24, %v1629_v45 }
0x1517   :  { %v1633_v50 = vpack.c.bf16 %v1631_v48, %v1631_v48  ;;  %3093 = vmatmul.mubr.msk.bf16.vlgmr.msra.gmra.mrb[44].mxu0 %vm208_vm2, %v1632_v47 }
0x1518   :  { %3103 = vmatpush3.bf16.xpose.msra.mxu0 %v1739_v51  ;;  %3104 = vmatprep.mubr.msk.bf16.mxu0 %vm3448_vm1, %v3447_v17 }
0x1519   :  { %3099 = vmatmul.mubr.msk.bf16.vlgmr.msra.gmra.mrb[48].mxu1 %vm208_vm2, %v1633_v50  ;;  %3114 = vmatprep.subr.bf16.mxu0 %v3447_v17 }
0x151a   :  { %3109 = vmatpush3.bf16.xpose.msra.mxu1 %v1790_v52  ;;  %3110 = vmatprep.mubr.msk.bf16.mxu1 %vm3448_vm1, %v3447_v17 }
0x151b   :  { %3120 = vmatprep.subr.bf16.mxu1 %v3447_v17 }
0x151f   :  { %3105 = vmatmul.mubr.msk.bf16.vlgmr.msra.gmra.mrb[48].mxu0 %vm208_vm2, %v1732_v55 }
0x1520   :  { %3116 = vmatprep.mubr.msk.bf16.mxu0 %vm3448_vm1, %v3447_v17 }
0x1521   :  { %3111 = vmatmul.mubr.msk.bf16.vlgmr.msra.gmra.mrb[52].mxu1 %vm208_vm2, %v1783_v56 }
0x1522   :  { %3122 = vmatprep.mubr.msk.bf16.mxu1 %vm3448_vm1, %v3447_v17 }
0x15ea   :  { %v3993_v41 = vpop.f32.mrb[44].mxu0 }
0x15eb   :  { %v3094_v38 = vpop.f32.mrb[45].mxu0 }
0x15ec   :  { %v1679_v57 = vpop.f32.mrb[46].mxu0  ;;  %v3995_v58 = vpop.f32.mrb[48].mxu1 }
0x15ed   :  { %v3095_v59 = vpop.f32.mrb[47].mxu0  ;;  %v3100_v62 = vpop.f32.mrb[49].mxu1 }
0x15ee   :  { %v1727_v2 = vpop.f32.mrb[50].mxu1 }
0x15ef   :  { %v3101_v33 = vpop.f32.mrb[51].mxu1 }
0x15f2   :  { %v1775_v37 = vpop.f32.mrb[48].mxu0 }
0x15f3   :  { %v3106_v0 = vpop.f32.mrb[49].mxu0  ;;  %v1832_v39 = vsel %vm208_vm2, %v1775_v37, -inf }
0x15f4   :  { %1833 = vmax.xlane.f32.xlu1 %v1832_v39  ;;  %v1778_v3 = vpop.f32.mrb[50].mxu0  ;;  %v1826_v4 = vpop.f32.mrb[52].mxu1 }
0x15f5   :  { %v3107_v6 = vpop.f32.mrb[51].mxu0  ;;  %v3112_v54 = vpop.f32.mrb[53].mxu1  ;;  %v1835_v7 = vsel %vm208_vm2, %v1826_v4, -inf }
0x15f6   :  { %1836 = vmax.xlane.f32.xlu0 %v1835_v7  ;;  %v1829_v8 = vpop.f32.mrb[54].mxu1 }
0x15f7   :  { %v3113_v9 = vpop.f32.mrb[55].mxu1 }
0x1605   :  { %1862 = vrot.lane.b32.xlu1 %v3933_v61, %s3453_s16 }
0x1609   :  { %1960 = vrot.lane.b32.xlu1 %v3933_v61, %s3454_s17 }
0x160d   :  { %2010 = vrot.lane.b32.xlu1 %v3935_v46, %s3454_s17 }
0x1611   :  { %1958 = vrot.lane.b32.xlu1 %v3945_v1, %s3455_s20 }
0x1681   :  { %v1834_v10 = vpop.xlane.xlu1 %1833 }
0x1682   :  { %v1838_v11 = vsub.f32 %v1775_v37, %v1834_v10 }
0x1683   :  { %v1837_v13 = vpop.xlane.xlu0 %1836 }
0x1684   :  { %v1840_v14 = vmul.f32 1.442695, %v1838_v11  ;;  %v1839_v15 = vsub.f32 %v1826_v4, %v1837_v13 }
0x1685   :  { %v1863_v16 = vpop.permute.xlu1 %1862 }
0x1686   :  { %3310 = vpow2.f32 %v1840_v14  ;;  %v1842_v18 = vmul.f32 1.442695, %v1839_v15  ;;  %v1868_v19 = vsel %vm339_vm3, %v1863_v16, 0 }
0x1687   :  { %3115 = vmatpush3.bf16.msra.mxu0 %v1868_v19 }
0x1688   :  { %3312 = vpow2.f32 %v1842_v18  ;;  %3126 = vmatprep.subr.bf16.mxu0 %v3447_v17 }
0x1689   :  { %v1961_v31 = vpop.permute.xlu1 %1960 }
0x168a   :  { %v1966_v40 = vsel %vm208_vm2, %v1961_v31, 0 }
0x168d   :  { %v2011_v44 = vpop.permute.xlu1 %2010 }
0x168e   :  { %v2016_v47 = vsel %vm208_vm2, %v2011_v44, 0 }
0x1690   :  { %v3311_v60 = vpop.eup %3310 }
0x1691   :  { %v1844_v20 = vsel %vm208_vm2, %v3311_v60, 0.0  ;;  %v1959_v48 = vpop.permute.xlu1 %1958 }
0x1692   :  { %v3313_v53 = vpop.eup %3312  ;;  %1845 = vadd.xlane.f32.xlu0 %v1844_v20 }
0x1693   :  { %v1847_v21 = vsel %vm208_vm2, %v3313_v53, 0.0 }
0x1696   :  { %1848 = vadd.xlane.f32.xlu0 %v1847_v21 }
0x16ac   :  { %1910 = vrot.lane.b32.xlu0 %v3935_v46, %s3453_s16 }
0x16b0   :  { %2008 = vrot.lane.b32.xlu0 %v3947_v5, %s3455_s20 }
0x171f   :  { %v1846_v63 = vpop.xlane.xlu0 %1845 }
0x1720   :  { %3314 = vrcp.f32 %v1846_v63 }
0x1723   :  { %v1849_v22 = vpop.xlane.xlu0 %1848 }
0x1724   :  { %3316 = vrcp.f32 %v1849_v22 }
0x1727   :  { %v1911_v23 = vpop.permute.xlu0 %1910 }
0x1728   :  { %v1916_v24 = vsel %vm339_vm3, %v1911_v23, 0 }
0x1729   :  { %3121 = vmatpush3.bf16.msra.mxu1 %v1916_v24 }
0x172a   :  { %v3315_v25 = vpop.eup %3314  ;;  %3132 = vmatprep.subr.bf16.mxu1 %v3447_v17 }
0x172b   :  { %v1852_v26 = vmul.f32 %v3315_v25, %v1846_v63  ;;  %v2009_v49 = vpop.permute.xlu0 %2008 }
0x172d   :  { %v1854_v27 = vsub.f32 2.0, %v1852_v26 }
0x172e   :  { %v3317_v28 = vpop.eup %3316 }
0x172f   :  { %v1856_v29 = vmul.f32 %v3315_v25, %v1854_v27  ;;  %v1853_v30 = vmul.f32 %v3317_v28, %v1849_v22 }
0x1731   :  { %v1858_v32 = vmul.f32 %v3311_v60, %v1856_v29  ;;  %v1855_v34 = vsub.f32 2.0, %v1853_v30 }
0x1733   :  { %v1860_v35 = vpack.c.bf16 %v1858_v32, %v1858_v32  ;;  %v1857_v36 = vmul.f32 %v3317_v28, %v1855_v34 }
0x1735   :  { %v1859_v42 = vmul.f32 %v3313_v53, %v1857_v36  ;;  %3117 = vmatmul.mubr.msk.bf16.vlgmr.msra.gmra.mrb[52].mxu0 %vm208_vm2, %v1860_v35 }
0x1736   :  { %3127 = vmatpush3.bf16.xpose.msra.mxu0 %v1966_v40  ;;  %3128 = vmatprep.mubr.msk.bf16.mxu0 %vm3448_vm1, %v3447_v17 }
0x1737   :  { %v1861_v45 = vpack.c.bf16 %v1859_v42, %v1859_v42  ;;  %3138 = vmatprep.subr.bf16.mxu0 %v3447_v17 }
0x1739   :  { %3123 = vmatmul.mubr.msk.bf16.vlgmr.msra.gmra.mrb[56].mxu1 %vm208_vm2, %v1861_v45 }
0x173a   :  { %3133 = vmatpush3.bf16.xpose.msra.mxu1 %v2016_v47  ;;  %3134 = vmatprep.mubr.msk.bf16.mxu1 %vm3448_vm1, %v3447_v17 }
0x173b   :  { %3144 = vmatprep.subr.bf16.mxu1 %v3447_v17 }
0x173d   :  { %3129 = vmatmul.mubr.msk.bf16.vlgmr.msra.gmra.mrb[56].mxu0 %vm208_vm2, %v1959_v48 }
0x173e   :  { %3140 = vmatprep.mubr.msk.bf16.mxu0 %vm3448_vm1, %v3447_v17 }
0x1741   :  { %3135 = vmatmul.mubr.msk.bf16.vlgmr.msra.gmra.mrb[60].mxu1 %vm208_vm2, %v2009_v49 }
0x1742   :  { %3146 = vmatprep.mubr.msk.bf16.mxu1 %vm3448_vm1, %v3447_v17 }
0x1808   :  { %v4033_v50 = vpop.f32.mrb[52].mxu0 }
0x1809   :  { %v3118_v51 = vpop.f32.mrb[53].mxu0 }
0x180a   :  { %v1907_v52 = vpop.f32.mrb[54].mxu0 }
0x180b   :  { %v3119_v55 = vpop.f32.mrb[55].mxu0 }
0x180c   :  { %v4035_v56 = vpop.f32.mrb[56].mxu1 }
0x180d   :  { %v3239_v38 = vpack.i.bf16 %v4035_v56, %v4033_v50  ;;  %v3124_v57 = vpop.f32.mrb[57].mxu1 }
0x180e   :  { %v1955_v59 = vpop.f32.mrb[58].mxu1 }
0x180f   :  { %v3125_v62 = vpop.f32.mrb[59].mxu1 }
0x1810   :  { %v2002_v2 = vpop.f32.mrb[56].mxu0 }
0x1811   :  { %v3130_v33 = vpop.f32.mrb[57].mxu0  ;;  %v2058_v37 = vsel %vm208_vm2, %v2002_v2, -inf }
0x1812   :  { %2059 = vmax.xlane.f32.xlu1 %v2058_v37  ;;  %v2005_v0 = vpop.f32.mrb[58].mxu0 }
0x1813   :  { %v3131_v39 = vpop.f32.mrb[59].mxu0 }
0x1814   :  { %v2052_v3 = vpop.f32.mrb[60].mxu1 }
0x1815   :  { %v3136_v4 = vpop.f32.mrb[61].mxu1  ;;  %v2061_v6 = vsel %vm208_vm2, %v2052_v3, -inf }
0x1816   :  { %2062 = vmax.xlane.f32.xlu0 %v2061_v6  ;;  %v2055_v54 = vpop.f32.mrb[62].mxu1 }
0x1817   :  { %v3137_v7 = vpop.f32.mrb[63].mxu1 }
0x1823   :  { %2088 = vrot.lane.b32.xlu1 %v3933_v61, %s3456_s21 }
0x1827   :  { %2186 = vrot.lane.b32.xlu1 %v3933_v61, %s3457_s22 }
0x182b   :  { %2236 = vrot.lane.b32.xlu1 %v3935_v46, %s3457_s22 }
0x182f   :  { %2184 = vrot.lane.b32.xlu1 %v3945_v1, %s4245_s1 }
0x189f   :  { %v2060_v8 = vpop.xlane.xlu1 %2059 }
0x18a0   :  { %v2064_v9 = vsub.f32 %v2002_v2, %v2060_v8 }
0x18a2   :  { %v2066_v10 = vmul.f32 1.442695, %v2064_v9 }
0x18a3   :  { %v2089_v11 = vpop.permute.xlu1 %2088  ;;  %v2063_v13 = vpop.xlane.xlu0 %2062 }
0x18a4   :  { %3318 = vpow2.f32 %v2066_v10  ;;  %v2094_v14 = vsel %vm339_vm3, %v2089_v11, 0  ;;  %v2065_v15 = vsub.f32 %v2052_v3, %v2063_v13 }
0x18a5   :  { %3139 = vmatpush3.bf16.msra.mxu0 %v2094_v14 }
0x18a6   :  { %v2068_v16 = vmul.f32 1.442695, %v2065_v15  ;;  %3150 = vmatprep.subr.bf16.mxu0 %v3447_v17 }
0x18a7   :  { %v2187_v28 = vpop.permute.xlu1 %2186 }
0x18a8   :  { %3320 = vpow2.f32 %v2068_v16  ;;  %v2192_v32 = vsel %vm208_vm2, %v2187_v28, 0  ;;  %v2817_v28 = vld [vmem:[%s4223_s5 + $0x20] sm:$0xff] }
0x18ab   :  { %v2237_v35 = vpop.permute.xlu1 %2236 }
0x18ac   :  { %v2242_v40 = vsel %vm208_vm2, %v2237_v35, 0 }
0x18ae   :  { %v3319_v18 = vpop.eup %3318 }
0x18af   :  { %v2070_v19 = vsel %vm208_vm2, %v3319_v18, 0.0  ;;  %v2185_v42 = vpop.permute.xlu1 %2184 }
0x18b0   :  { %2071 = vadd.xlane.f32.xlu0 %v2070_v19 }
0x18b2   :  { %v3321_v60 = vpop.eup %3320 }
0x18b3   :  { %v2073_v1 = vsel %vm208_vm2, %v3321_v60, 0.0 }
0x18b4   :  { %2074 = vadd.xlane.f32.xlu0 %v2073_v1 }
0x18ca   :  { %2136 = vrot.lane.b32.xlu0 %v3935_v46, %s3456_s21  ;;  %s4248_s21 = smov 24  }
0x18ce   :  { %2234 = vrot.lane.b32.xlu0 %v3947_v5, %s4245_s1 }
0x193d   :  { %v2072_v20 = vpop.xlane.xlu0 %2071 }
0x193e   :  { %3322 = vrcp.f32 %v2072_v20 }
0x1941   :  { %v2075_v53 = vpop.xlane.xlu0 %2074 }
0x1942   :  { %3324 = vrcp.f32 %v2075_v53 }
0x1945   :  { %v2137_v21 = vpop.permute.xlu0 %2136 }
0x1946   :  { %v2142_v63 = vsel %vm339_vm3, %v2137_v21, 0 }
0x1947   :  { %3145 = vmatpush3.bf16.msra.mxu1 %v2142_v63 }
0x1948   :  { %v3323_v22 = vpop.eup %3322  ;;  %3156 = vmatprep.subr.bf16.mxu1 %v3447_v17 }
0x1949   :  { %v2078_v23 = vmul.f32 %v3323_v22, %v2072_v20  ;;  %v2235_v44 = vpop.permute.xlu0 %2234 }
0x194b   :  { %v2080_v24 = vsub.f32 2.0, %v2078_v23 }
0x194c   :  { %v3325_v25 = vpop.eup %3324 }
0x194d   :  { %v2082_v26 = vmul.f32 %v3323_v22, %v2080_v24  ;;  %v2079_v27 = vmul.f32 %v3325_v25, %v2075_v53 }
0x194f   :  { %v2084_v29 = vmul.f32 %v3319_v18, %v2082_v26  ;;  %v2081_v30 = vsub.f32 2.0, %v2079_v27 }
0x1951   :  { %v2086_v5 = vpack.c.bf16 %v2084_v29, %v2084_v29  ;;  %v2083_v31 = vmul.f32 %v3325_v25, %v2081_v30  ;;  %v2818_v29 = vld [vmem:[%s4223_s5 + $0x28] sm:$0xff] }
0x1952   :  { %v2446_v30 = vpack.c.bf16 %v2818_v29, %v2817_v28 }
0x1953   :  { %v2085_v34 = vmul.f32 %v3321_v60, %v2083_v31  ;;  %3141 = vmatmul.mubr.msk.bf16.vlgmr.msra.gmra.mrb[60].mxu0 %vm208_vm2, %v2086_v5  ;;  %v2819_v5 = vld [vmem:[%s4223_s5 + $0x30] sm:$0xff]  ;;  %v2820_v31 = vld [vmem:[%s4223_s5 + $0x38] sm:$0xff] }
0x1954   :  { %3151 = vmatpush3.bf16.xpose.msra.mxu0 %v2192_v32  ;;  %3152 = vmatprep.mubr.msk.bf16.mxu0 %vm3448_vm1, %v3447_v17  ;;  %v2447_v32 = vpack.c.bf16 %v2820_v31, %v2819_v5  ;;  %v2826_v5 = vld [vmem:[%s4225_s7 + $0x1] ss:$0 sm:$0xff] }
0x1955   :  { %v2087_v36 = vpack.c.bf16 %v2085_v34, %v2085_v34  ;;  %3162 = vmatprep.subr.bf16.mxu0 %v3447_v17 }
0x1957   :  { %3147 = vmatmul.mubr.msk.bf16.vlgmr.msra.gmra.mrb[64].mxu1 %vm208_vm2, %v2087_v36 }
0x1958   :  { %3157 = vmatpush3.bf16.xpose.msra.mxu1 %v2242_v40  ;;  %3158 = vmatprep.mubr.msk.bf16.mxu1 %vm3448_vm1, %v3447_v17 }
0x1959   :  { %3168 = vmatprep.subr.bf16.mxu1 %v3447_v17 }
0x195b   :  { %3153 = vmatmul.mubr.msk.bf16.vlgmr.msra.gmra.mrb[64].mxu0 %vm208_vm2, %v2185_v42 }
0x195c   :  { %3164 = vmatprep.mubr.msk.bf16.mxu0 %vm3448_vm1, %v3447_v17 }
0x195f   :  { %3159 = vmatmul.mubr.msk.bf16.vlgmr.msra.gmra.mrb[68].mxu1 %vm208_vm2, %v2235_v44 }
0x1960   :  { %3170 = vmatprep.mubr.msk.bf16.mxu1 %vm3448_vm1, %v3447_v17 }
0x1a26   :  { %v2130_v45 = vpop.f32.mrb[60].mxu0 }
0x1a27   :  { %v3142_v47 = vpop.f32.mrb[61].mxu0 }
0x1a28   :  { %v2133_v48 = vpop.f32.mrb[62].mxu0 }
0x1a29   :  { %v3143_v49 = vpop.f32.mrb[63].mxu0 }
0x1a2a   :  { %v2178_v51 = vpop.f32.mrb[64].mxu1 }
0x1a2b   :  { %v3244_v52 = vpack.i.bf16 %v2178_v51, %v2130_v45  ;;  %v3148_v55 = vpop.f32.mrb[65].mxu1 }
0x1a2c   :  { %v2181_v57 = vpop.f32.mrb[66].mxu1 }
0x1a2d   :  { %v3149_v59 = vpop.f32.mrb[67].mxu1 }
0x1a2e   :  { %v2228_v62 = vpop.f32.mrb[64].mxu0 }
0x1a2f   :  { %v3154_v2 = vpop.f32.mrb[65].mxu0  ;;  %v2284_v33 = vsel %vm208_vm2, %v2228_v62, -inf }
0x1a30   :  { %2285 = vmax.xlane.f32.xlu1 %v2284_v33  ;;  %v2231_v37 = vpop.f32.mrb[66].mxu0 }
0x1a31   :  { %v3155_v0 = vpop.f32.mrb[67].mxu0 }
0x1a32   :  { %v2278_v39 = vpop.f32.mrb[68].mxu1 }
0x1a33   :  { %v3160_v3 = vpop.f32.mrb[69].mxu1  ;;  %v2287_v4 = vsel %vm208_vm2, %v2278_v39, -inf }
0x1a34   :  { %2288 = vmax.xlane.f32.xlu0 %v2287_v4  ;;  %v2281_v6 = vpop.f32.mrb[70].mxu1 }
0x1a35   :  { %v3161_v54 = vpop.f32.mrb[71].mxu1 }
0x1a41   :  { %2314 = vrot.lane.b32.xlu1 %v3933_v61, %s4246_s2 }
0x1a45   :  { %3240 = vrot.lane.b32.xlu1 %v3239_v38, %s4247_s4 }
0x1a49   :  { %3245 = vrot.lane.b32.xlu1 %v3244_v52, %s4244_s0 }
0x1abd   :  { %v2286_v7 = vpop.xlane.xlu1 %2285 }
0x1abe   :  { %v2290_v8 = vsub.f32 %v2228_v62, %v2286_v7 }
0x1ac0   :  { %v2292_v9 = vmul.f32 1.442695, %v2290_v8 }
0x1ac1   :  { %v2315_v10 = vpop.permute.xlu1 %2314  ;;  %v2289_v11 = vpop.xlane.xlu0 %2288 }
0x1ac2   :  { %3326 = vpow2.f32 %v2292_v9  ;;  %v2320_v13 = vsel %vm339_vm3, %v2315_v10, 0  ;;  %v2291_v14 = vsub.f32 %v2278_v39, %v2289_v11 }
0x1ac3   :  { %3163 = vmatpush3.bf16.msra.mxu0 %v2320_v13 }
0x1ac4   :  { %v2294_v15 = vmul.f32 1.442695, %v2291_v14  ;;  %3174 = vmatprep.subr.bf16.mxu0 %v3447_v17 }
0x1ac5   :  { %v3241_v49 = vpop.permute.xlu1 %3240 }
0x1ac6   :  { %3328 = vpow2.f32 %v2294_v15  ;;  %v3243_v52 = vunpack.i.h.bf16 %v3241_v49  ;;  %v3242_v55 = vunpack.i.l.bf16 %v3241_v49  ;;  %v2836_v49 = vld [vmem:[%s4229_s11 + $0x50] sm:$0xff] }
0x1ac8   :  { %v2435_v2 = vsel %vm208_vm2, %v3995_v58, %v3243_v52  ;;  %v2434_v33 = vsel %vm208_vm2, %v3993_v41, %v3242_v55  ;;  %v2823_v41 = vld [vmem:[%s4224_s6 + $0x1] ss:$0 sm:$0xff] }
0x1ac9   :  { %v3246_v51 = vpop.permute.xlu1 %3245  ;;  %v2838_v55 = vld [vmem:[%s4229_s11 + $0x60] sm:$0xff] }
0x1aca   :  { %v3248_v57 = vunpack.i.h.bf16 %v3246_v51  ;;  %v3247_v59 = vunpack.i.l.bf16 %v3246_v51  ;;  %v2837_v51 = vld [vmem:[%s4229_s11 + $0x58] sm:$0xff] }
0x1acb   :  { %v2639_v52 = vpack.c.bf16 %v2837_v51, %v2836_v49 }
0x1acc   :  { %v3327_v61 = vpop.eup %3326  ;;  %v2437_v39 = vsel %vm1137_vm4, %v2435_v2, %v3248_v57  ;;  %v2436_v3 = vsel %vm1137_vm4, %v2434_v33, %v3247_v59  ;;  %v2839_v57 = vld [vmem:[%s4229_s11 + $0x68] sm:$0xff]  ;;  %v2841_v2 = vld [vmem:[%s4229_s11 + $0x78] sm:$0xff] }
0x1acd   :  { %v2296_v50 = vsel %vm208_vm2, %v3327_v61, 0.0  ;;  %v2640_v59 = vpack.c.bf16 %v2839_v57, %v2838_v55 }
0x1ace   :  { %2297 = vadd.xlane.f32.xlu0 %v2296_v50 }
0x1ad0   :  { %v3329_v56 = vpop.eup %3328 }
0x1ad1   :  { %v2299_v38 = vsel %vm208_vm2, %v3329_v56, 0.0 }
0x1ad2   :  { %2300 = vadd.xlane.f32.xlu0 %v2299_v38 }
0x1ae8   :  { %2362 = vrot.lane.b32.xlu0 %v3935_v46, %s4246_s2 }
0x1b5b   :  { %v2298_v16 = vpop.xlane.xlu0 %2297 }
0x1b5c   :  { %3330 = vrcp.f32 %v2298_v16 }
0x1b5f   :  { %v2301_v18 = vpop.xlane.xlu0 %2300 }
0x1b60   :  { %3332 = vrcp.f32 %v2301_v18 }
0x1b63   :  { %v2363_v19 = vpop.permute.xlu0 %2362 }
0x1b64   :  { %v2368_v60 = vsel %vm339_vm3, %v2363_v19, 0 }
0x1b65   :  { %3169 = vmatpush3.bf16.msra.mxu1 %v2368_v60 }
0x1b66   :  { %v3331_v1 = vpop.eup %3330  ;;  %3182 = vmatprep.subr.bf16.mxu1 %v3447_v17 }
0x1b67   :  { %v2304_v20 = vmul.f32 %v3331_v1, %v2298_v16 }
0x1b69   :  { %v2306_v53 = vsub.f32 2.0, %v2304_v20  ;;  %v2828_v20 = vld [vmem:[%s4227_s9 + $0x20] sm:$0xff] }
0x1b6a   :  { %v3333_v21 = vpop.eup %3332 }
0x1b6b   :  { %v2308_v63 = vmul.f32 %v3331_v1, %v2306_v53  ;;  %v2305_v22 = vmul.f32 %v3333_v21, %v2301_v18  ;;  %v2829_v53 = vld [vmem:[%s4227_s9 + $0x28] sm:$0xff] }
0x1b6d   :  { %v2310_v23 = vmul.f32 %v3327_v61, %v2308_v63  ;;  %v2307_v24 = vsub.f32 2.0, %v2305_v22  ;;  %v2830_v63 = vld [vmem:[%s4227_s9 + $0x30] sm:$0xff]  ;;  %v2831_v22 = vld [vmem:[%s4227_s9 + $0x38] sm:$0xff] }
0x1b6f   :  { %v2312_v25 = vpack.c.bf16 %v2310_v23, %v2310_v23  ;;  %v2309_v46 = vmul.f32 %v3333_v21, %v2307_v24  ;;  %v2556_v21 = vpack.c.bf16 %v2829_v53, %v2828_v20  ;;  %v2557_v23 = vpack.c.bf16 %v2831_v22, %v2830_v63  ;;  %v2843_v20 = vld [vmem:[#allocation7 + $0x1] ss:$0 sm:$0xff] }
0x1b71   :  { %v2311_v26 = vmul.f32 %v3329_v56, %v2309_v46  ;;  %3165 = vmatmul.mubr.msk.bf16.vlgmr.msra.gmra.mrb[68].mxu0 %vm208_vm2, %v2312_v25 }
0x1b72   :  { %3178 = vmatprep.mubr.msk.bf16.mxu0 %vm3448_vm1, %v3447_v17  ;;  %3175 = vmatpush3.bf16.msra.mxu0 %v2446_v30 }
0x1b73   :  { %v2313_v27 = vpack.c.bf16 %v2311_v26, %v2311_v26  ;;  %3176 = vmatprep.subr.bf16.mxu0 %v3447_v17 }
0x1b75   :  { %3171 = vmatmul.mubr.msk.bf16.vlgmr.msra.gmra.mrb[72].mxu1 %vm208_vm2, %v2313_v27 }
0x1b76   :  { %3186 = vmatprep.mubr.msk.bf16.mxu1 %vm3448_vm1, %v3447_v17  ;;  %3177 = vmatpush3.bf16.msra.mxu0 %v2447_v32 }
0x1b77   :  { %3190 = vmatprep.subr.bf16.mxu0 %v3447_v17  ;;  %3183 = vmatpush3.bf16.msra.mxu1 %v2556_v21 }
0x1b78   :  { %3184 = vmatprep.subr.bf16.mxu1 %v3447_v17 }
0x1b7b   :  { %3185 = vmatpush3.bf16.msra.mxu1 %v2557_v23 }
0x1c44   :  { %v2356_v34 = vpop.f32.mrb[68].mxu0 }
0x1c45   :  { %v3166_v35 = vpop.f32.mrb[69].mxu0 }
0x1c46   :  { %v2359_v36 = vpop.f32.mrb[70].mxu0  ;;  %v2827_v35 = vld [vmem:[%s4226_s8 + $0x1] ss:$0 sm:$0xff] }
0x1c47   :  { %v3167_v40 = vpop.f32.mrb[71].mxu0 }
0x1c48   :  { %v2404_v42 = vpop.f32.mrb[72].mxu1 }
0x1c49   :  { %v3249_v44 = vpack.i.bf16 %v2404_v42, %v2356_v34  ;;  %v3172_v45 = vpop.f32.mrb[73].mxu1 }
0x1c4a   :  { %v2407_v47 = vpop.f32.mrb[74].mxu1  ;;  %v2834_v45 = vld [vmem:[%s4229_s11 + $0x40] sm:$0xff] }
0x1c4b   :  { %3250 = vrot.lane.b32.xlu1 %v3249_v44, %s4248_s21  ;;  %v3173_v48 = vpop.f32.mrb[75].mxu1  ;;  %v2835_v47 = vld [vmem:[%s4229_s11 + $0x48] sm:$0xff] }
0x1c4c   :  { %v2638_v48 = vpack.c.bf16 %v2835_v47, %v2834_v45 }
0x1cbd   :  { %v3251_v62 = vpop.permute.xlu1 %3250 }
0x1cbe   :  { %v3253_v37 = vunpack.i.h.bf16 %v3251_v62  ;;  %v3252_v0 = vunpack.i.l.bf16 %v3251_v62  ;;  %v2840_v62 = vld [vmem:[%s4229_s11 + $0x70] sm:$0xff] }
0x1cbf   :  { %v2641_v33 = vpack.c.bf16 %v2841_v2, %v2840_v62 }
0x1cc0   :  { %v2439_v4 = vsel %vm1140_vm5, %v2437_v39, %v3253_v37  ;;  %v2438_v6 = vsel %vm1140_vm5, %v2436_v3, %v3252_v0  ;;  %v2832_v37 = vld [vmem:[#allocation5 + $0x1] ss:$0 sm:$0xff] }
0x1cc1   :  { %v2445_v54 = vpack.c.bf16 %v2439_v4, %v2438_v6 }
0x1cc3   :  { %3179 = vmatmul.mubr.msk.bf16.vlgmr.msra.gmra.mrb[72].mxu0 %vm97_vm0, %v2445_v54 }
0x1cc4   :  { %3198 = vmatprep.mubr.msk.bf16.mxu0 %vm3448_vm1, %v3447_v17  ;;  %3191 = vmatpush3.bf16.msra.mxu0 %v2638_v48  ;;  %v2844_v48 = vld [vmem:[%s4231_s13] ss:$0 sm:$0xff] }
0x1cc5   :  { %3192 = vmatprep.subr.bf16.mxu0 %v3447_v17 }
0x1cc8   :  { %3193 = vmatpush3.bf16.msra.mxu0 %v2639_v52  ;;  %v2845_v52 = vld [vmem:[%s4232_s14] ss:$0 sm:$0xff] }
0x1cc9   :  { %3194 = vmatprep.subr.bf16.mxu0 %v3447_v17 }
0x1ccc   :  { %3195 = vmatpush3.bf16.msra.mxu0 %v2640_v59 }
0x1ccd   :  { %3196 = vmatprep.subr.bf16.mxu0 %v3447_v17 }
0x1cd0   :  { %3197 = vmatpush3.bf16.msra.mxu0 %v2641_v33 }
0x1d96   :  { %v2485_v58 = vpop.f32.mrb[72].mxu0 }
0x1d97   :  { %v2492_v7 = vadd.f32 %v2485_v58, %v3894_v12  ;;  %v3180_v8 = vpop.f32.mrb[73].mxu0 }
0x1d98   :  { %v2488_v9 = vpop.f32.mrb[74].mxu0 }
0x1d99   :  { %v4128_v10 = vadd.f32 %v2823_v41, %v2492_v7  ;;  %v2493_v11 = vadd.f32 %v2488_v9, %v3897_v43  ;;  %v3181_v13 = vpop.f32.mrb[75].mxu0 }
0x1d9b   :  { %v4131_v14 = vadd.f32 %v2823_v41, %v2493_v11  ;;  %v2508_v15 = vsel %vm97_vm0, %v4128_v10, 0.0 }
0x1d9c   :  { %2509 = vadd.xlane.f32.xlu0 %v2508_v15 }
0x1d9d   :  { %v2511_v61 = vsel %vm97_vm0, %v4131_v14, 0.0 }
0x1d9e   :  { %2512 = vadd.xlane.f32.xlu1 %v2511_v61 }
0x1e29   :  { %v2510_v50 = vpop.xlane.xlu0 %2509 }
0x1e2a   :  { %v2514_v56 = vmul.f32 0.03125, %v2510_v50 }
0x1e2b   :  { %v2513_v12 = vpop.xlane.xlu1 %2512 }
0x1e2c   :  { %v2516_v38 = vsub.f32 %v4128_v10, %v2514_v56  ;;  %v2515_v16 = vmul.f32 0.03125, %v2513_v12 }
0x1e2e   :  { %v2517_v18 = vsub.f32 %v4131_v14, %v2515_v16  ;;  %v2518_v43 = vmul.f32 %v2516_v38, %v2516_v38 }
0x1e30   :  { %v2520_v19 = vsel %vm97_vm0, %v2518_v43, 0.0  ;;  %v2519_v60 = vmul.f32 %v2517_v18, %v2517_v18 }
0x1e31   :  { %2521 = vadd.xlane.f32.xlu0 %v2520_v19 }
0x1e32   :  { %v2523_v1 = vsel %vm97_vm0, %v2519_v60, 0.0 }
0x1e35   :  { %2524 = vadd.xlane.f32.xlu0 %v2523_v1 }
0x1ebe   :  { %v2522_v24 = vpop.xlane.xlu0 %2521 }
0x1ebf   :  { %v2526_v25 = vmul.f32 0.03125, %v2522_v24 }
0x1ec1   :  { %v2528_v46 = vadd.f32 1e-06, %v2526_v25 }
0x1ec2   :  { %v2525_v26 = vpop.xlane.xlu0 %2524 }
0x1ec3   :  { %3334 = vrsqrt.f32 %v2528_v46  ;;  %v2527_v27 = vmul.f32 0.03125, %v2525_v26 }
0x1ec5   :  { %v2529_v28 = vadd.f32 1e-06, %v2527_v27 }
0x1ec7   :  { %3336 = vrsqrt.f32 %v2529_v28 }
0x1ecd   :  { %v3335_v29 = vpop.eup %3334 }
0x1ece   :  { %v2532_v30 = vmul.f32 %v3335_v29, %v2516_v38 }
0x1ed0   :  { %v2540_v32 = vmul.f32 %v2826_v5, %v2532_v30 }
0x1ed1   :  { %v3337_v31 = vpop.eup %3336 }
0x1ed2   :  { %v2533_v34 = vmul.f32 %v3337_v31, %v2517_v18  ;;  %v2548_v40 = vadd.f32 %v2827_v35, %v2540_v32 }
0x1ed4   :  { %v2541_v36 = vmul.f32 %v2826_v5, %v2533_v34 }
0x1ed6   :  { %v2549_v42 = vadd.f32 %v2827_v35, %v2541_v36 }
0x1ed8   :  { %v2555_v44 = vpack.c.bf16 %v2549_v42, %v2548_v40 }
0x1eda   :  { %3187 = vmatmul.mubr.msk.bf16.vlgmr.msra.gmra.mrb[76].mxu1 %vm97_vm0, %v2555_v44 }
0x1fad   :  { %v2603_v0 = vpop.f32.mrb[76].mxu1 }
0x1fae   :  { %v2604_v39 = vadd.f32 %v2832_v37, %v2603_v0  ;;  %v3188_v3 = vpop.f32.mrb[77].mxu1 }
0x1faf   :  { %v2606_v4 = vpop.f32.mrb[78].mxu1 }
0x1fb0   :  { %v2610_v6 = vmul.f32 %v2604_v39, %v2604_v39  ;;  %v2607_v54 = vadd.f32 %v2832_v37, %v2606_v4  ;;  %v3189_v58 = vpop.f32.mrb[79].mxu1 }
0x1fb2   :  { %v2612_v41 = vmul.f32 %v2610_v6, %v2604_v39  ;;  %v2611_v17 = vmul.f32 %v2607_v54, %v2607_v54 }
0x1fb4   :  { %v2614_v7 = vmul.f32 0.044715, %v2612_v41  ;;  %v2613_v8 = vmul.f32 %v2611_v17, %v2607_v54 }
0x1fb6   :  { %v2616_v9 = vadd.f32 %v2614_v7, %v2604_v39  ;;  %v2615_v11 = vmul.f32 0.044715, %v2613_v8 }
0x1fb8   :  { %v2618_v13 = vmul.f32 0.7978846, %v2616_v9  ;;  %v2617_v15 = vadd.f32 %v2615_v11, %v2607_v54 }
0x1fba   :  { %3338 = vtanh.f32 %v2618_v13  ;;  %v2619_v61 = vmul.f32 0.7978846, %v2617_v15 }
0x1fbc   :  { %3340 = vtanh.f32 %v2619_v61 }
0x1fc4   :  { %v3339_v50 = vpop.eup %3338 }
0x1fc5   :  { %v2622_v56 = vadd.f32 1.0, %v3339_v50 }
0x1fc6   :  { %v3341_v12 = vpop.eup %3340 }
0x1fc7   :  { %v2624_v38 = vmul.f32 0.5, %v2622_v56  ;;  %v2623_v16 = vadd.f32 1.0, %v3341_v12 }
0x1fc9   :  { %v2625_v18 = vmul.f32 0.5, %v2623_v16  ;;  %v2626_v43 = vmul.f32 %v2624_v38, %v2604_v39 }
0x1fcb   :  { %v2627_v19 = vmul.f32 %v2625_v18, %v2607_v54 }
0x1fcd   :  { %v2637_v60 = vpack.c.bf16 %v2627_v19, %v2626_v43 }
0x1fcf   :  { %3199 = vmatmul.mubr.msk.bf16.vlgmr.msra.gmra.mrb[76].mxu0 %vm1338_vm6, %v2637_v60 }
0x20a2   :  { %v2679_v1 = vpop.f32.mrb[76].mxu0 }
0x20a3   :  { %v2686_v53 = vadd.f32 %v2679_v1, %v4128_v10  ;;  %v3200_v21 = vpop.f32.mrb[77].mxu0 }
0x20a4   :  { %v2682_v63 = vpop.f32.mrb[78].mxu0 }
0x20a5   :  { %v2696_v22 = vadd.f32 %v2843_v20, %v2686_v53  ;;  %v2687_v23 = vadd.f32 %v2682_v63, %v4131_v14  ;;  %v3201_v24 = vpop.f32.mrb[79].mxu0 }
0x20a7   :  { %v2697_v25 = vadd.f32 %v2843_v20, %v2687_v23  ;;  %v2700_v46 = vsel %vm97_vm0, %v2696_v22, 0.0 }
0x20a8   :  { %2701 = vadd.xlane.f32.xlu0 %v2700_v46 }
0x20a9   :  { %v2703_v26 = vsel %vm97_vm0, %v2697_v25, 0.0 }
0x20aa   :  { %2704 = vadd.xlane.f32.xlu1 %v2703_v26 }
0x2135   :  { %v2702_v27 = vpop.xlane.xlu0 %2701 }
0x2136   :  { %v2706_v28 = vmul.f32 0.03125, %v2702_v27 }
0x2137   :  { %v2705_v29 = vpop.xlane.xlu1 %2704 }
0x2138   :  { %v2708_v30 = vsub.f32 %v2696_v22, %v2706_v28  ;;  %v2707_v5 = vmul.f32 0.03125, %v2705_v29 }
0x213a   :  { %v2709_v31 = vsub.f32 %v2697_v25, %v2707_v5  ;;  %v2710_v10 = vmul.f32 %v2708_v30, %v2708_v30 }
0x213c   :  { %v2712_v32 = vsel %vm97_vm0, %v2710_v10, 0.0  ;;  %v2711_v34 = vmul.f32 %v2709_v31, %v2709_v31 }
0x213d   :  { %2713 = vadd.xlane.f32.xlu0 %v2712_v32 }
0x213e   :  { %v2715_v14 = vsel %vm97_vm0, %v2711_v34, 0.0 }
0x213f   :  { %2716 = vadd.xlane.f32.xlu1 %v2715_v14 }
0x21ca   :  { %v2714_v35 = vpop.xlane.xlu0 %2713 }
0x21cb   :  { %v2718_v36 = vmul.f32 0.03125, %v2714_v35 }
0x21cc   :  { %v2717_v40 = vpop.xlane.xlu1 %2716 }
0x21cd   :  { %v2720_v42 = vadd.f32 1e-06, %v2718_v36  ;;  %v2719_v44 = vmul.f32 0.03125, %v2717_v40 }
0x21cf   :  { %3342 = vrsqrt.f32 %v2720_v42  ;;  %v2721_v45 = vadd.f32 1e-06, %v2719_v44 }
0x21d1   :  { %3344 = vrsqrt.f32 %v2721_v45 }
0x21d9   :  { %v3343_v47 = vpop.eup %3342 }
0x21da   :  { %v2724_v49 = vmul.f32 %v3343_v47, %v2708_v30 }
0x21db   :  { %v3345_v51 = vpop.eup %3344 }
0x21dc   :  { %v2725_v55 = vmul.f32 %v3345_v51, %v2709_v31  ;;  %v2732_v57 = vmul.f32 %v2844_v48, %v2724_v49 }
0x21de   :  { %v2733_v59 = vmul.f32 %v2844_v48, %v2725_v55  ;;  %v2740_v62 = vadd.f32 %v2845_v52, %v2732_v57 }
0x21e0   :  { %v2741_v2 = vadd.f32 %v2845_v52, %v2733_v59  ;;  %2742 = vst.msk [vmem:[#allocation8] sm:$0xff] %vm97_vm0, %v2740_v62 }
0x21e2   :  { %2743 = vst.msk [vmem:[#allocation8 + $0x8] sm:$0xff] %vm97_vm0, %v2741_v2 }
0x21e3   :  { %3423 = shalt.err (!%p3420_p0)
}
0x21e4   :  { %s3424_s19 = scalar_lea.hbm %s4233_s15, 256 }
0x21e5   :  { %p3425_p1 = scmp.ne.s32.totalorder %s4233_s15, %s3424_s19  ;;  %p3428_p2 = scmp.lt.u32.totalorder %s3424_s19, %s4233_s15 }
0x21e7   :  { %p3430_p3 = pnand %p3428_p2, %p3425_p1 }
0x21e9   :  { %3433 = shalt.err (!%p3430_p3)
}
0x21ea   :  { %s4249_s0 = smov 128  }
0x21eb   :  { %2755 = dma.vmem_to_hbm [thread:$0]  %s2750_s3, 256, %s4233_s15, [#allocation4], %s4249_s0, %s4249_s0, %s4247_s4  }
0x21ec   :  { %3438 = dma.done.wait [#allocation4], 256  }
0x21ed   :  { %3439 = vsyncadd [#allocation4], 4294967040 }
0x21ee   :  { %2759 = vsyncpa [#allocation3], 1 }
0x21ef   :  { %2760 = vsyncpa [#allocation6], 1 }
0x21f0   :  { %2761 = vsyncpa [#allocation4], 1 }

</bundles_post_ra>
